<compile_context>
chip_gen: v7x
topology: tpu7x:2x2x1
jax: 0.10.0
libtpu: 0.0.40
codegen_flags: <defaults>
</compile_context>

<pallas_src>
import functools
import math

import jax
import jax.numpy as jnp
import numpy as np
from jax.experimental import pallas as pl
from jax.experimental.pallas import tpu as pltpu


def _round_up(x, m):
    return ((x + m - 1) // m) * m


def _vae_kernel(x_ref, eps_ref,
                w1_ref, b1_ref, w2_ref, b2_ref, w3_ref, b3_ref,
                w4_ref, b4_ref, w5_ref, b5_ref, w6_ref, b6_ref,
                recon_ref, mulv_ref):
    bf16 = jnp.bfloat16
    f32 = jnp.float32

    x = x_ref[...]                       # already bf16 (streamed as bf16)

    # ---- encoder: bf16 matmuls, f32 MXU accumulation, f32 nonlinearities ----
    h = jnp.dot(x, w1_ref[...], preferred_element_type=f32) + b1_ref[...]
    h = jnp.maximum(h, 0.0)
    h = jnp.dot(h.astype(bf16), w2_ref[...], preferred_element_type=f32) + b2_ref[...]
    h = jnp.maximum(h, 0.0)
    # fused fc31|fc32 padded to 128 lanes: [:, :z] = mu, [:, z:2z] = log_var
    mulv = jnp.dot(h.astype(bf16), w3_ref[...], preferred_element_type=f32) + b3_ref[...]

    z_dim = eps_ref.shape[-1]
    mu = mulv[:, :z_dim]
    log_var = mulv[:, z_dim:2 * z_dim]

    # ---- sampling (reparameterization trick) ----
    std = jnp.exp(0.5 * log_var)
    z = eps_ref[...] * std + mu

    # ---- decoder ----
    d = jnp.dot(z.astype(bf16), w4_ref[...], preferred_element_type=f32) + b4_ref[...]
    d = jnp.maximum(d, 0.0)
    d = jnp.dot(d.astype(bf16), w5_ref[...], preferred_element_type=f32) + b5_ref[...]
    d = jnp.maximum(d, 0.0)
    logits = jnp.dot(d.astype(bf16), w6_ref[...], preferred_element_type=f32) + b6_ref[...]

    # sigmoid(x) = 0.5 * (1 + tanh(0.5*x)): one EUP push instead of exp+recip.
    recon_ref[...] = (0.5 + 0.5 * jnp.tanh(0.5 * logits)).astype(recon_ref.dtype)
    mulv_ref[...] = mulv


def init_vae_params(key, x_dim, h_dim1, h_dim2, z_dim):
    """PyTorch nn.Linear-style init (U(-1/sqrt(fan_in), +1/sqrt(fan_in))).

    Weights are stored as (in_features, out_features); biases as (1, out)."""
    def linear(key, fan_in, fan_out):
        kw, kb = jax.random.split(key)
        bound = 1.0 / math.sqrt(fan_in)
        w = jax.random.uniform(kw, (fan_in, fan_out), jnp.float32, -bound, bound)
        b = jax.random.uniform(kb, (1, fan_out), jnp.float32, -bound, bound)
        return w, b

    keys = jax.random.split(key, 7)
    params = {}
    params["fc1"] = linear(keys[0], x_dim, h_dim1)
    params["fc2"] = linear(keys[1], h_dim1, h_dim2)
    params["fc31"] = linear(keys[2], h_dim2, z_dim)
    params["fc32"] = linear(keys[3], h_dim2, z_dim)
    params["fc4"] = linear(keys[4], z_dim, h_dim2)
    params["fc5"] = linear(keys[5], h_dim2, h_dim1)
    params["fc6"] = linear(keys[6], h_dim1, x_dim)
    return params


@functools.partial(jax.jit, static_argnames=("x_dim", "tb"))
def vae_forward(x, eps, params, x_dim, *, tb=512):
    """x: any shape with total size divisible by x_dim (mirrors x.view(-1, 784)).

    tb: batch tile (rows per grid step, multiple of 16). Weights stay
    VMEM-resident across the grid; x/recon are streamed in bf16."""
    f32 = jnp.float32
    bf16 = jnp.bfloat16

    # Fused reshape + cast; no HBM zero-pad pass over x.
    x2 = x.reshape(-1, x_dim).astype(bf16)
    B = x2.shape[0]
    eps = eps.astype(f32)

    z_dim = params["fc31"][0].shape[1]
    h1 = params["fc1"][0].shape[1]
    h2 = params["fc2"][0].shape[1]
    mulv_w = _round_up(2 * z_dim, 128)   # lane-dense mu|log_var output

    # Batch tile: multiple of 16 (bf16 sublane packing), clamped to the batch.
    tb = max(16, min(_round_up(tb, 16), _round_up(B, 16)))
    # Guarantee >=2 grid steps when possible so "parallel" can shard across
    # both TensorCores on v7x (weights stay resident either way).
    if pl.cdiv(B, tb) < 2 and B > 16:
        tb = max(16, _round_up(pl.cdiv(B, 2), 16))
    grid = (pl.cdiv(B, tb),)

    w1, b1 = params["fc1"]
    w2, b2 = params["fc2"]
    w31, b31 = params["fc31"]
    w32, b32 = params["fc32"]
    w4, b4 = params["fc4"]
    w5, b5 = params["fc5"]
    w6, b6 = params["fc6"]

    # Fused fc31|fc32, zero-padded to mulv_w output lanes (pad cols must be 0).
    pad_cols = mulv_w - 2 * z_dim
    w3 = jnp.pad(jnp.concatenate([w31, w32], axis=1),
                 ((0, 0), (0, pad_cols))).astype(bf16)
    b3 = jnp.pad(jnp.concatenate([b31, b32], axis=1), ((0, 0), (0, pad_cols)))

    flat_params = (w1.astype(bf16), b1, w2.astype(bf16), b2, w3, b3,
                   w4.astype(bf16), b4, w5.astype(bf16), b5,
                   w6.astype(bf16), b6)

    def row_spec(cols):
        return pl.BlockSpec((tb, cols), lambda i: (i, 0))

    def const_spec(shape):
        return pl.BlockSpec(shape, lambda i: (0, 0))

    in_specs = [row_spec(x_dim), row_spec(z_dim)] + \
               [const_spec(p.shape) for p in flat_params]
    out_specs = (row_spec(x_dim), row_spec(mulv_w))
    out_shape = (jax.ShapeDtypeStruct((B, x_dim), bf16),    # reconstruction
                 jax.ShapeDtypeStruct((B, mulv_w), f32))    # mu | log_var packed

    def _nbytes(a):
        return int(np.prod(a.shape)) * jnp.dtype(a.dtype).itemsize

    weight_bytes = sum(_nbytes(p) for p in flat_params)
    io_tile_bytes = tb * (x_dim * 2 + z_dim * 4 + x_dim * 2 + mulv_w * 4)
    act_tile_bytes = tb * (h1 + h2 + mulv_w + h2 + h1) * 4
    # double-buffered I/O tiles + resident weights + intermediate headroom;
    # comfortably inside v7x's 64 MiB physical VMEM.
    vmem_limit = min(48 << 20,
                     max(16 << 20,
                         2 * (weight_bytes + io_tile_bytes)
                         + act_tile_bytes + (8 << 20)))

    flops = 2 * B * (x_dim * h1 + h1 * h2 + h2 * mulv_w +
                     z_dim * h2 + h2 * h1 + h1 * x_dim)
    transcendentals = B * (z_dim + x_dim)   # exp (sampling) + tanh (sigmoid)
    bytes_accessed = (weight_bytes + _nbytes(x2) + _nbytes(eps)
                      + B * x_dim * 2 + B * mulv_w * 4)

    recon, mulv = pl.pallas_call(
        _vae_kernel,
        grid=grid,
        in_specs=in_specs,
        out_specs=out_specs,
        out_shape=out_shape,
        compiler_params=pltpu.CompilerParams(
            dimension_semantics=("parallel",),
            vmem_limit_bytes=int(vmem_limit)),
        cost_estimate=pl.CostEstimate(
            flops=int(flops),
            transcendentals=int(transcendentals),
            bytes_accessed=int(bytes_accessed)),
    )(x2, eps, *flat_params)

    mu = mulv[:, :z_dim]
    log_var = mulv[:, z_dim:2 * z_dim]
    return recon, mu, log_var


def _vae_reference(x, eps, params, x_dim):
    """Pure-JAX f32 reference for correctness check."""
    x2 = x.reshape(-1, x_dim).astype(jnp.float32)
    relu = jax.nn.relu
    h = relu(x2 @ params["fc1"][0] + params["fc1"][1])
    h = relu(h @ params["fc2"][0] + params["fc2"][1])
    mu = h @ params["fc31"][0] + params["fc31"][1]
    log_var = h @ params["fc32"][0] + params["fc32"][1]
    z = eps * jnp.exp(0.5 * log_var) + mu
    d = relu(z @ params["fc4"][0] + params["fc4"][1])
    d = relu(d @ params["fc5"][0] + params["fc5"][1])
    recon = jax.nn.sigmoid(d @ params["fc6"][0] + params["fc6"][1])
    return recon, mu, log_var


if __name__ == "__main__":
    # MNIST-like sizes (x_dim fixed to 784 by x.view(-1, 784) in the module).
    x_dim, h_dim1, h_dim2, z_dim = 784, 256, 128, 32
    batch = 200          # not a multiple of the tile -> exercises the partial tail block
    tile_b = 64          # small tile so the test exercises a multi-step grid

    key = jax.random.PRNGKey(0)
    k_params, k_x, k_eps = jax.random.split(key, 3)

    params = init_vae_params(k_params, x_dim, h_dim1, h_dim2, z_dim)

    # Input in NCHW like a PyTorch MNIST batch; forward flattens it to (-1, 784).
    x = jax.random.uniform(k_x, (batch, 1, 28, 28), jnp.float32)
    eps = jax.random.normal(k_eps, (batch, z_dim), jnp.float32)  # randn_like(std)

    recon, mu, log_var = vae_forward(x, eps, params, x_dim, tb=tile_b)
    jax.block_until_ready((recon, mu, log_var))

    # Correctness check against pure-JAX f32 reference (kernel matmuls are bf16
    # with f32 accumulation and recon is stored in bf16, so tolerances are
    # loosened accordingly).
    r_ref, mu_ref, lv_ref = _vae_reference(x, eps, params, x_dim)
    np.testing.assert_allclose(np.asarray(recon.astype(jnp.float32)),
                               np.asarray(r_ref), rtol=3e-2, atol=3e-2)
    np.testing.assert_allclose(np.asarray(mu), np.asarray(mu_ref),
                               rtol=3e-2, atol=3e-2)
    np.testing.assert_allclose(np.asarray(log_var), np.asarray(lv_ref),
                               rtol=3e-2, atol=3e-2)

    print("KERNEL_OK")
</pallas_src>

<mosaic_0001>
module attributes {stable_mosaic.version = 11 : i64} {
  func.func @_vae_kernel(%arg0: i32, %arg1: memref<64x784xbf16, #tpu.memory_space<vmem>>, %arg2: memref<64x32xf32, #tpu.memory_space<vmem>>, %arg3: memref<784x256xbf16, #tpu.memory_space<vmem>>, %arg4: memref<1x256xf32, #tpu.memory_space<vmem>>, %arg5: memref<256x128xbf16, #tpu.memory_space<vmem>>, %arg6: memref<1x128xf32, #tpu.memory_space<vmem>>, %arg7: memref<128x128xbf16, #tpu.memory_space<vmem>>, %arg8: memref<1x128xf32, #tpu.memory_space<vmem>>, %arg9: memref<32x128xbf16, #tpu.memory_space<vmem>>, %arg10: memref<1x128xf32, #tpu.memory_space<vmem>>, %arg11: memref<128x256xbf16, #tpu.memory_space<vmem>>, %arg12: memref<1x256xf32, #tpu.memory_space<vmem>>, %arg13: memref<256x784xbf16, #tpu.memory_space<vmem>>, %arg14: memref<1x784xf32, #tpu.memory_space<vmem>>, %arg15: memref<64x784xbf16, #tpu.memory_space<vmem>>, %arg16: memref<64x128xf32, #tpu.memory_space<vmem>>) attributes {dimension_semantics = [#tpu.dimension_semantics<parallel>], iteration_bounds = array<i64: 4>, scalar_prefetch = 0 : i64, scratch_operands = 0 : i64, tpu.core_type = #tpu.core_type<tc>, window_params = [{transform_indices = @transform_0, window_bounds = array<i64: 64, 784>}, {transform_indices = @transform_1, window_bounds = array<i64: 64, 32>}, {pipeline_mode = #tpu.pipeline_mode<synchronous>, transform_indices = @transform_2, window_bounds = array<i64: 784, 256>}, {pipeline_mode = #tpu.pipeline_mode<synchronous>, transform_indices = @transform_3, window_bounds = array<i64: 1, 256>}, {pipeline_mode = #tpu.pipeline_mode<synchronous>, transform_indices = @transform_4, window_bounds = array<i64: 256, 128>}, {pipeline_mode = #tpu.pipeline_mode<synchronous>, transform_indices = @transform_5, window_bounds = array<i64: 1, 128>}, {pipeline_mode = #tpu.pipeline_mode<synchronous>, transform_indices = @transform_6, window_bounds = array<i64: 128, 128>}, {pipeline_mode = #tpu.pipeline_mode<synchronous>, transform_indices = @transform_7, window_bounds = array<i64: 1, 128>}, {pipeline_mode = #tpu.pipeline_mode<synchronous>, transform_indices = @transform_8, window_bounds = array<i64: 32, 128>}, {pipeline_mode = #tpu.pipeline_mode<synchronous>, transform_indices = @transform_9, window_bounds = array<i64: 1, 128>}, {pipeline_mode = #tpu.pipeline_mode<synchronous>, transform_indices = @transform_10, window_bounds = array<i64: 128, 256>}, {pipeline_mode = #tpu.pipeline_mode<synchronous>, transform_indices = @transform_11, window_bounds = array<i64: 1, 256>}, {pipeline_mode = #tpu.pipeline_mode<synchronous>, transform_indices = @transform_12, window_bounds = array<i64: 256, 784>}, {pipeline_mode = #tpu.pipeline_mode<synchronous>, transform_indices = @transform_13, window_bounds = array<i64: 1, 784>}, {transform_indices = @transform_14, window_bounds = array<i64: 64, 784>}, {transform_indices = @transform_15, window_bounds = array<i64: 64, 128>}]} {
    %c0 = arith.constant 0 : index
    %c0_0 = arith.constant 0 : index
    %0 = vector.load %arg1[%c0, %c0_0] : memref<64x784xbf16, #tpu.memory_space<vmem>>, vector<64x784xbf16>
    %c0_1 = arith.constant 0 : index
    %c0_2 = arith.constant 0 : index
    %1 = vector.load %arg3[%c0_1, %c0_2] : memref<784x256xbf16, #tpu.memory_space<vmem>>, vector<784x256xbf16>
    %cst = arith.constant dense<0.000000e+00> : vector<64x256xf32>
    %2 = tpu.matmul %0, %1, %cst {dimension_numbers = #tpu.dot_dimension_numbers<[1], [0], [0], [1], [0, 0, 1, 1], [], []>} : vector<64x784xbf16>, vector<784x256xbf16>, vector<64x256xf32> -> vector<64x256xf32>
    %c0_3 = arith.constant 0 : index
    %c0_4 = arith.constant 0 : index
    %3 = vector.load %arg4[%c0_3, %c0_4] : memref<1x256xf32, #tpu.memory_space<vmem>>, vector<1x256xf32>
    %4 = vector.broadcast %3 : vector<1x256xf32> to vector<64x256xf32>
    %5 = arith.addf %2, %4 : vector<64x256xf32>
    %cst_5 = arith.constant 0.000000e+00 : f32
    %6 = vector.broadcast %cst_5 : f32 to vector<64x256xf32>
    %7 = arith.maximumf %5, %6 : vector<64x256xf32>
    %8 = arith.truncf %7 : vector<64x256xf32> to vector<64x256xbf16>
    %c0_6 = arith.constant 0 : index
    %c0_7 = arith.constant 0 : index
    %9 = vector.load %arg5[%c0_6, %c0_7] : memref<256x128xbf16, #tpu.memory_space<vmem>>, vector<256x128xbf16>
    %cst_8 = arith.constant dense<0.000000e+00> : vector<64x128xf32>
    %10 = tpu.matmul %8, %9, %cst_8 {dimension_numbers = #tpu.dot_dimension_numbers<[1], [0], [0], [1], [0, 0, 1, 1], [], []>} : vector<64x256xbf16>, vector<256x128xbf16>, vector<64x128xf32> -> vector<64x128xf32>
    %c0_9 = arith.constant 0 : index
    %c0_10 = arith.constant 0 : index
    %11 = vector.load %arg6[%c0_9, %c0_10] : memref<1x128xf32, #tpu.memory_space<vmem>>, vector<1x128xf32>
    %12 = vector.broadcast %11 : vector<1x128xf32> to vector<64x128xf32>
    %13 = arith.addf %10, %12 : vector<64x128xf32>
    %cst_11 = arith.constant 0.000000e+00 : f32
    %14 = vector.broadcast %cst_11 : f32 to vector<64x128xf32>
    %15 = arith.maximumf %13, %14 : vector<64x128xf32>
    %16 = arith.truncf %15 : vector<64x128xf32> to vector<64x128xbf16>
    %c0_12 = arith.constant 0 : index
    %c0_13 = arith.constant 0 : index
    %17 = vector.load %arg7[%c0_12, %c0_13] : memref<128x128xbf16, #tpu.memory_space<vmem>>, vector<128x128xbf16>
    %cst_14 = arith.constant dense<0.000000e+00> : vector<64x128xf32>
    %18 = tpu.matmul %16, %17, %cst_14 {dimension_numbers = #tpu.dot_dimension_numbers<[1], [0], [0], [1], [0, 0, 1, 1], [], []>} : vector<64x128xbf16>, vector<128x128xbf16>, vector<64x128xf32> -> vector<64x128xf32>
    %c0_15 = arith.constant 0 : index
    %c0_16 = arith.constant 0 : index
    %19 = vector.load %arg8[%c0_15, %c0_16] : memref<1x128xf32, #tpu.memory_space<vmem>>, vector<1x128xf32>
    %20 = vector.broadcast %19 : vector<1x128xf32> to vector<64x128xf32>
    %21 = arith.addf %18, %20 : vector<64x128xf32>
    %22 = vector.extract_strided_slice %21 {offsets = [0, 0], sizes = [64, 32], strides = [1, 1]} : vector<64x128xf32> to vector<64x32xf32>
    %23 = vector.extract_strided_slice %21 {offsets = [0, 32], sizes = [64, 32], strides = [1, 1]} : vector<64x128xf32> to vector<64x32xf32>
    %cst_17 = arith.constant 5.000000e-01 : f32
    %24 = vector.broadcast %cst_17 : f32 to vector<64x32xf32>
    %25 = arith.mulf %24, %23 : vector<64x32xf32>
    %26 = math.exp %25 : vector<64x32xf32>
    %c0_18 = arith.constant 0 : index
    %c0_19 = arith.constant 0 : index
    %27 = vector.load %arg2[%c0_18, %c0_19] : memref<64x32xf32, #tpu.memory_space<vmem>>, vector<64x32xf32>
    %28 = arith.mulf %27, %26 : vector<64x32xf32>
    %29 = arith.addf %28, %22 : vector<64x32xf32>
    %30 = arith.truncf %29 : vector<64x32xf32> to vector<64x32xbf16>
    %c0_20 = arith.constant 0 : index
    %c0_21 = arith.constant 0 : index
    %31 = vector.load %arg9[%c0_20, %c0_21] : memref<32x128xbf16, #tpu.memory_space<vmem>>, vector<32x128xbf16>
    %cst_22 = arith.constant dense<0.000000e+00> : vector<64x128xf32>
    %32 = tpu.matmul %30, %31, %cst_22 {dimension_numbers = #tpu.dot_dimension_numbers<[1], [0], [0], [1], [0, 0, 1, 1], [], []>} : vector<64x32xbf16>, vector<32x128xbf16>, vector<64x128xf32> -> vector<64x128xf32>
    %c0_23 = arith.constant 0 : index
    %c0_24 = arith.constant 0 : index
    %33 = vector.load %arg10[%c0_23, %c0_24] : memref<1x128xf32, #tpu.memory_space<vmem>>, vector<1x128xf32>
    %34 = vector.broadcast %33 : vector<1x128xf32> to vector<64x128xf32>
    %35 = arith.addf %32, %34 : vector<64x128xf32>
    %cst_25 = arith.constant 0.000000e+00 : f32
    %36 = vector.broadcast %cst_25 : f32 to vector<64x128xf32>
    %37 = arith.maximumf %35, %36 : vector<64x128xf32>
    %38 = arith.truncf %37 : vector<64x128xf32> to vector<64x128xbf16>
    %c0_26 = arith.constant 0 : index
    %c0_27 = arith.constant 0 : index
    %39 = vector.load %arg11[%c0_26, %c0_27] : memref<128x256xbf16, #tpu.memory_space<vmem>>, vector<128x256xbf16>
    %cst_28 = arith.constant dense<0.000000e+00> : vector<64x256xf32>
    %40 = tpu.matmul %38, %39, %cst_28 {dimension_numbers = #tpu.dot_dimension_numbers<[1], [0], [0], [1], [0, 0, 1, 1], [], []>} : vector<64x128xbf16>, vector<128x256xbf16>, vector<64x256xf32> -> vector<64x256xf32>
    %c0_29 = arith.constant 0 : index
    %c0_30 = arith.constant 0 : index
    %41 = vector.load %arg12[%c0_29, %c0_30] : memref<1x256xf32, #tpu.memory_space<vmem>>, vector<1x256xf32>
    %42 = vector.broadcast %41 : vector<1x256xf32> to vector<64x256xf32>
    %43 = arith.addf %40, %42 : vector<64x256xf32>
    %cst_31 = arith.constant 0.000000e+00 : f32
    %44 = vector.broadcast %cst_31 : f32 to vector<64x256xf32>
    %45 = arith.maximumf %43, %44 : vector<64x256xf32>
    %46 = arith.truncf %45 : vector<64x256xf32> to vector<64x256xbf16>
    %c0_32 = arith.constant 0 : index
    %c0_33 = arith.constant 0 : index
    %47 = vector.load %arg13[%c0_32, %c0_33] : memref<256x784xbf16, #tpu.memory_space<vmem>>, vector<256x784xbf16>
    %cst_34 = arith.constant dense<0.000000e+00> : vector<64x784xf32>
    %48 = tpu.matmul %46, %47, %cst_34 {dimension_numbers = #tpu.dot_dimension_numbers<[1], [0], [0], [1], [0, 0, 1, 1], [], []>} : vector<64x256xbf16>, vector<256x784xbf16>, vector<64x784xf32> -> vector<64x784xf32>
    %c0_35 = arith.constant 0 : index
    %c0_36 = arith.constant 0 : index
    %49 = vector.load %arg14[%c0_35, %c0_36] : memref<1x784xf32, #tpu.memory_space<vmem>>, vector<1x784xf32>
    %50 = vector.broadcast %49 : vector<1x784xf32> to vector<64x784xf32>
    %51 = arith.addf %48, %50 : vector<64x784xf32>
    %cst_37 = arith.constant 5.000000e-01 : f32
    %52 = vector.broadcast %cst_37 : f32 to vector<64x784xf32>
    %53 = arith.mulf %52, %51 : vector<64x784xf32>
    %54 = math.tanh %53 : vector<64x784xf32>
    %cst_38 = arith.constant 5.000000e-01 : f32
    %55 = vector.broadcast %cst_38 : f32 to vector<64x784xf32>
    %56 = arith.mulf %55, %54 : vector<64x784xf32>
    %cst_39 = arith.constant 5.000000e-01 : f32
    %57 = vector.broadcast %cst_39 : f32 to vector<64x784xf32>
    %58 = arith.addf %57, %56 : vector<64x784xf32>
    %59 = arith.truncf %58 : vector<64x784xf32> to vector<64x784xbf16>
    %c0_40 = arith.constant 0 : index
    %c0_41 = arith.constant 0 : index
    %60 = vector.load %arg15[%c0_40, %c0_41] : memref<64x784xbf16, #tpu.memory_space<vmem>>, vector<64x784xbf16>
    tpu.vector_store %arg15[%c0_40, %c0_41], %59 {strides = array<i32>} : memref<64x784xbf16, #tpu.memory_space<vmem>>, vector<64x784xbf16>,
    %c0_42 = arith.constant 0 : index
    %c0_43 = arith.constant 0 : index
    %61 = vector.load %arg16[%c0_42, %c0_43] : memref<64x128xf32, #tpu.memory_space<vmem>>, vector<64x128xf32>
    tpu.vector_store %arg16[%c0_42, %c0_43], %21 {strides = array<i32>} : memref<64x128xf32, #tpu.memory_space<vmem>>, vector<64x128xf32>,
    return
  }
  func.func @transform_0(%arg0: i32) -> (i32, i32) {
    %c0_i32 = arith.constant 0 : i32
    %c0_i32_0 = arith.constant 0 : i32
    return %arg0, %c0_i32 : i32, i32
  }
  func.func @transform_1(%arg0: i32) -> (i32, i32) {
    %c0_i32 = arith.constant 0 : i32
    %c0_i32_0 = arith.constant 0 : i32
    return %arg0, %c0_i32 : i32, i32
  }
  func.func @transform_2(%arg0: i32) -> (i32, i32) {
    %c0_i32 = arith.constant 0 : i32
    %c0_i32_0 = arith.constant 0 : i32
    %c0_i32_1 = arith.constant 0 : i32
    return %c0_i32, %c0_i32_0 : i32, i32
  }
  func.func @transform_3(%arg0: i32) -> (i32, i32) {
    %c0_i32 = arith.constant 0 : i32
    %c0_i32_0 = arith.constant 0 : i32
    %c0_i32_1 = arith.constant 0 : i32
    return %c0_i32, %c0_i32_0 : i32, i32
  }
  func.func @transform_4(%arg0: i32) -> (i32, i32) {
    %c0_i32 = arith.constant 0 : i32
    %c0_i32_0 = arith.constant 0 : i32
    %c0_i32_1 = arith.constant 0 : i32
    return %c0_i32, %c0_i32_0 : i32, i32
  }
  func.func @transform_5(%arg0: i32) -> (i32, i32) {
    %c0_i32 = arith.constant 0 : i32
    %c0_i32_0 = arith.constant 0 : i32
    %c0_i32_1 = arith.constant 0 : i32
    return %c0_i32, %c0_i32_0 : i32, i32
  }
  func.func @transform_6(%arg0: i32) -> (i32, i32) {
    %c0_i32 = arith.constant 0 : i32
    %c0_i32_0 = arith.constant 0 : i32
    %c0_i32_1 = arith.constant 0 : i32
    return %c0_i32, %c0_i32_0 : i32, i32
  }
  func.func @transform_7(%arg0: i32) -> (i32, i32) {
    %c0_i32 = arith.constant 0 : i32
    %c0_i32_0 = arith.constant 0 : i32
    %c0_i32_1 = arith.constant 0 : i32
    return %c0_i32, %c0_i32_0 : i32, i32
  }
  func.func @transform_8(%arg0: i32) -> (i32, i32) {
    %c0_i32 = arith.constant 0 : i32
    %c0_i32_0 = arith.constant 0 : i32
    %c0_i32_1 = arith.constant 0 : i32
    return %c0_i32, %c0_i32_0 : i32, i32
  }
  func.func @transform_9(%arg0: i32) -> (i32, i32) {
    %c0_i32 = arith.constant 0 : i32
    %c0_i32_0 = arith.constant 0 : i32
    %c0_i32_1 = arith.constant 0 : i32
    return %c0_i32, %c0_i32_0 : i32, i32
  }
  func.func @transform_10(%arg0: i32) -> (i32, i32) {
    %c0_i32 = arith.constant 0 : i32
    %c0_i32_0 = arith.constant 0 : i32
    %c0_i32_1 = arith.constant 0 : i32
    return %c0_i32, %c0_i32_0 : i32, i32
  }
  func.func @transform_11(%arg0: i32) -> (i32, i32) {
    %c0_i32 = arith.constant 0 : i32
    %c0_i32_0 = arith.constant 0 : i32
    %c0_i32_1 = arith.constant 0 : i32
    return %c0_i32, %c0_i32_0 : i32, i32
  }
  func.func @transform_12(%arg0: i32) -> (i32, i32) {
    %c0_i32 = arith.constant 0 : i32
    %c0_i32_0 = arith.constant 0 : i32
    %c0_i32_1 = arith.constant 0 : i32
    return %c0_i32, %c0_i32_0 : i32, i32
  }
  func.func @transform_13(%arg0: i32) -> (i32, i32) {
    %c0_i32 = arith.constant 0 : i32
    %c0_i32_0 = arith.constant 0 : i32
    %c0_i32_1 = arith.constant 0 : i32
    return %c0_i32, %c0_i32_0 : i32, i32
  }
  func.func @transform_14(%arg0: i32) -> (i32, i32) {
    %c0_i32 = arith.constant 0 : i32
    %c0_i32_0 = arith.constant 0 : i32
    return %arg0, %c0_i32 : i32, i32
  }
  func.func @transform_15(%arg0: i32) -> (i32, i32) {
    %c0_i32 = arith.constant 0 : i32
    %c0_i32_0 = arith.constant 0 : i32
    return %arg0, %c0_i32 : i32, i32
  }
}

</mosaic_0001>

<bundles_post_ra>
// kernel: vae_forward.1
= control target key start
LH: loop header
LB: loop body
LE: loop exit
PB: predicated region body
PF: predicated region fallthrough
CT: control target
= control target key end

     0   :  { %s7055_s0 = inlined_call_operand.vmem [shape: bf16[200,784], index: 0, kind: input, shape index: {}]   ;;  %s7056_s1 = inlined_call_operand.vmem [shape: f32[200,32], index: 1, kind: input, shape index: {}]   ;;  %s7057_s2 = inlined_call_operand.vmem [shape: bf16[784,256], index: 2, kind: input, shape index: {}]   ;;  %s7058_s3 = inlined_call_operand.vmem [shape: f32[1,256], index: 3, kind: input, shape index: {}]   ;;  %s7059_s4 = inlined_call_operand.vmem [shape: bf16[256,128], index: 4, kind: input, shape index: {}]   ;;  %s7060_s5 = inlined_call_operand.vmem [shape: f32[1,128], index: 5, kind: input, shape index: {}]   ;;  %s7061_s6 = inlined_call_operand.vmem [shape: bf16[128,128], index: 6, kind: input, shape index: {}]   ;;  %s7062_s7 = inlined_call_operand.vmem [shape: f32[1,128], index: 7, kind: input, shape index: {}]   ;;  %s7063_s8 = inlined_call_operand.vmem [shape: bf16[32,128], index: 8, kind: input, shape index: {}]   ;;  %s7064_s9 = inlined_call_operand.vmem [shape: f32[1,128], index: 9, kind: input, shape index: {}]   ;;  %s7065_s10 = inlined_call_operand.vmem [shape: bf16[128,256], index: 10, kind: input, shape index: {}]   ;;  %s7066_s11 = inlined_call_operand.vmem [shape: f32[1,256], index: 11, kind: input, shape index: {}]   ;;  %s7067_s12 = inlined_call_operand.vmem [shape: bf16[256,784], index: 12, kind: input, shape index: {}]   ;;  %s7068_s13 = inlined_call_operand.vmem [shape: f32[1,784], index: 13, kind: input, shape index: {}]   ;;  %s7069_s14 = inlined_call_operand.hbm [shape: bf16[200,784], index: 14, kind: output, shape index: {0}]   ;;  %s7070_s15 = inlined_call_operand.vmem [shape: f32[200,128], index: 15, kind: output, shape index: {1}]  }
   0x1   :  { %7078 = sst [smem:[#allocation12_spill]] %s7055_s0 }
   0x2   :  { %7079 = sst [smem:[#allocation13_spill]] %s7056_s1 }
   0x3   :  { %7080 = sst [smem:[#allocation14_spill]] %s7057_s2 }
   0x4   :  { %7081 = sst [smem:[#allocation15_spill]] %s7070_s15 }
   0x5   :  { %21 = vsyncpa [#allocation3], 0 }
   0x6   :  { %23 = vsyncpa [#allocation3 + $0x1], 0  ;;  %s5669_s18 = smov 0   ;;  %s5671_s19 = smov 0  }
   0x7   :  { %s5673_s20 = smov 0   ;;  %s5675_s21 = smov 0  }
   0x8 LB: > { %7082 = sst [smem:[#allocation6_spill]] %s5538_s18  ;;  %s5690_s22 = sadd.s32 4294967295, %s5550_s21   ;;  %s5550_s21 = sphi %s5675_s21, %s7101_s21   ;;  %s5546_s20 = sphi %s5673_s20, %s7103_s20   ;;  %s5542_s19 = sphi %s5671_s19, %s7105_s19   ;;  %s5538_s18 = sphi %s5669_s18, %s7104_s18  }
   0x9   : > { %7083 = sst [smem:[#allocation7_spill]] %s5546_s20  ;;  %s4217_s23 = sadd.s32 4294967294, %s5550_s21  }
   0xa   : > { %7084 = sst [smem:[#allocation8_spill]] %s5550_s21  ;;  %s5694_s24 = sadd.s32 1, %s5550_s21  }
   0xb   : > { %7085 = sst [smem:[#allocation9_spill]] %s5694_s24  ;;  %s340_s25 = sadd.s32 1, %s5546_s20 }
   0xc   : > { %s337_s26 = ssub.s32 %s5550_s21, %s5694_s24  ;;  %p350_p0 = scmp.ne.s32.totalorder %s5546_s20, %s5542_s19 }
   0xd   : > { %p338_p1 = scmp.eq.s32.totalorder %s337_s26, 0  ;;  %p351_p2 = scmp.eq.s32.totalorder %s5690_s22, 3 }
   0xe   : > { %p356_p3 = scmp.ne.s32.totalorder %s5542_s19, %s5538_s18  ;;  %p357_p4 = scmp.eq.s32.totalorder %s4217_s23, 3 }
   0xf   : > { %s5705_s27 = scalar_select %p338_p1, %s5546_s20, %s340_s25  }
  0x10   : > { %p5707_p5 = por %p351_p2, %p350_p0  ;;  %p5711_p6 = por %p357_p4, %p356_p3 }
  0x11   : > { %7086 = sst [smem:[#allocation10_spill]] %s5705_s27  ;;  %p4220_p7 = scmp.ge.s32.totalorder %s5550_s21, 1 }
  0x12   : > { %s7088_s29 = scalar_select %p5711_p6, 1, 0 }
  0x13   : > { %p474_p8 = scmp.lt.s32.totalorder %s5550_s21, 5 }
  0x14   : > { %7089 = sst [smem:[#allocation11_spill]] %s7088_s29 }
  0x15   : > { %p475_p9 = pnand %p4220_p7, %p474_p8 }
  0x16   : > { %s7090_s2 = sld [smem:[#allocation14_spill]] (!%p475_p9)  ;;  %s5733_s30 = sshll.u32 (!%p475_p9), %s5690_s22, 3  ;;  %v5584_v38 = vmov (!%p475_p9), 0   ;;  %vm1356_vm0 = vcmask (!%p475_p9), 130048   ;;  %v5118_v61 = vld [vmem:[%s7059_s4 + $0x40] sm:$0xff] (!%p475_p9)   ;;  %vm2140_vm1 = vcmask (!%p475_p9), 261120  }
  0x17   : > { %478 = sbr.rel (%p475_p9) target bundleno = 1912 (0x778), region = 76  ;;  %p547_p10 = scmp.lt.s32.totalorder (!%p475_p9), %s5733_s30, 24  ;;  %1620 = vmatprep.mubr.bf16.mxu1 (!%p475_p9), %v5584_v38  ;;  %v5119_v62 = vld [vmem:[%s7059_s4] sm:$0xff] (!%p475_p9)   ;;  %vm3863_vm2 = vcmask (!%p475_p9), 125952  }
  0x18   : > { %s7091_s0 = sld [smem:[#allocation12_spill]] (!%p475_p9)  ;;  %s6193_s16 = sand.u32 (!%p475_p9), 1, %s5542_s19  }
  0x19   : > { %s4221_s25 = sshll.u32 (!%p475_p9), %s6193_s16, 6  ;;  %s7092_s1 = sld [smem:[#allocation13_spill]] (!%p475_p9) }
  0x1a   : > { %s6207_s21 = scalar_lea.vmem (!%p475_p9), [#allocation4], %s4221_s25  }
  0x1c   : > { %v4931_v0 = vld [vmem:[%s7090_s2 + $0x4] ss:$8 sps:$4 sm:$0xff] (!%p475_p9)   ;;  %v4933_v1 = vld [vmem:[%s7090_s2] ss:$8 sps:$4 sm:$0xff] (!%p475_p9)   ;;  %v4934_v2 = vld [vmem:[%s7090_s2 + $0x14] ss:$8 sps:$4 sm:$0xff] (!%p475_p9)  }
  0x1d   : > { %1369 = vmatprep.subr.bf16.mxu0 (!%p475_p9), %v4931_v0  ;;  %v4936_v3 = vld [vmem:[%s7090_s2 + $0x10] ss:$8 sps:$4 sm:$0xff] (!%p475_p9)   ;;  %v4937_v4 = vld [vmem:[%s7090_s2 + $0x24] ss:$8 sps:$4 sm:$0xff] (!%p475_p9)   ;;  %v4939_v5 = vld [vmem:[%s7090_s2 + $0x20] ss:$8 sps:$4 sm:$0xff] (!%p475_p9)  }
  0x1e   : > { %1370 = vmatpush1.bf16.msra.mxu0 %v4933_v1  ;;  %v4940_v6 = vld [vmem:[%s7090_s2 + $0x34] ss:$8 sps:$4 sm:$0xff]   ;;  %v4942_v7 = vld [vmem:[%s7090_s2 + $0x30] ss:$8 sps:$4 sm:$0xff]   ;;  %s5746_s24 = scalar_select %p547_p10, %s5733_s30, 24  ;;  %v5120_v0 = vld [vmem:[%s7059_s4 + $0x48] sm:$0xff]  }
  0x1f   : > { %1371 = vmatprep.subr.bf16.mxu0 %v4934_v2  ;;  %v4943_v8 = vld [vmem:[%s7090_s2 + $0x44] ss:$8 sps:$4 sm:$0xff]   ;;  %v4945_v9 = vld [vmem:[%s7090_s2 + $0x40] ss:$8 sps:$4 sm:$0xff]   ;;  %v4946_v10 = vld [vmem:[%s7090_s2 + $0x54] ss:$8 sps:$4 sm:$0xff]  }
  0x20   : > { %s4823_s23 = smul.u32 28, %s5746_s24  ;;  %v4948_v11 = vld [vmem:[%s7090_s2 + $0x50] ss:$8 sps:$4 sm:$0xff]   ;;  %v4949_v12 = vld [vmem:[%s7090_s2 + $0x64] ss:$8 sps:$4 sm:$0xff]   ;;  %s4225_s17 = sshll.u32 %s5746_s24, 3 }
  0x21   : > { %v4951_v14 = vld [vmem:[%s7090_s2 + $0x60] ss:$8 sps:$4 sm:$0xff]   ;;  %v4952_v15 = vld [vmem:[%s7090_s2 + $0x74] ss:$8 sps:$4 sm:$0xff]   ;;  %v4954_v16 = vld [vmem:[%s7090_s2 + $0x70] ss:$8 sps:$4 sm:$0xff]   ;;  %s6262_s15 = scalar_lea.vmem %s7092_s1, %s4225_s17 }
  0x22   : > { %1372 = vmatpush1.bf16.msra.mxu0 %v4936_v3  ;;  %s5764_s29 = scalar_lea.vmem %s7091_s0, %s4823_s23  ;;  %v4955_v17 = vld [vmem:[%s7090_s2 + $0x84] ss:$8 sps:$4 sm:$0xff]   ;;  %v4957_v18 = vld [vmem:[%s7090_s2 + $0x80] ss:$8 sps:$4 sm:$0xff]   ;;  %v4958_v19 = vld [vmem:[%s7090_s2 + $0x94] ss:$8 sps:$4 sm:$0xff]  }
  0x23   : > { %1373 = vmatprep.subr.bf16.mxu0 %v4937_v4  ;;  %v4981_v13 = vld [vmem:[%s5764_s29 + $0x4] ss:$28 sps:$4 sm:$0xff]   ;;  %v4960_v20 = vld [vmem:[%s7090_s2 + $0x90] ss:$8 sps:$4 sm:$0xff]   ;;  %v4964_v23 = vld [vmem:[%s7090_s2 + $0xb4] ss:$8 sps:$4 sm:$0xff]  }
  0x24   : > { %1401 = vmatprep.mubr.bf16.mxu0 %v4981_v13  ;;  %v4961_v21 = vld [vmem:[%s7090_s2 + $0xa4] ss:$8 sps:$4 sm:$0xff]   ;;  %v4963_v22 = vld [vmem:[%s7090_s2 + $0xa0] ss:$8 sps:$4 sm:$0xff]   ;;  %v4966_v24 = vld [vmem:[%s7090_s2 + $0xb0] ss:$8 sps:$4 sm:$0xff]  }
  0x25   : > { %v4967_v25 = vld [vmem:[%s7090_s2 + $0xc4] ss:$8 sps:$4 sm:$0xff]   ;;  %v4969_v26 = vld [vmem:[%s7090_s2 + $0xc0] ss:$8 sps:$4 sm:$0xff]   ;;  %v4970_v27 = vld [vmem:[%s7090_s2 + $0xd4] ss:$8 sps:$4 sm:$0xff]  }
  0x26   : > { %1374 = vmatpush1.bf16.msra.mxu0 %v4939_v5  ;;  %v4972_v28 = vld [vmem:[%s7090_s2 + $0xd0] ss:$8 sps:$4 sm:$0xff]   ;;  %v4973_v29 = vld [vmem:[%s7090_s2 + $0xe4] ss:$8 sps:$4 sm:$0xff]   ;;  %v4975_v30 = vld [vmem:[%s7090_s2 + $0xe0] ss:$8 sps:$4 sm:$0xff]  }
  0x27   : > { %1375 = vmatprep.subr.bf16.mxu0 %v4940_v6  ;;  %v4976_v31 = vld [vmem:[%s7090_s2 + $0xf4] ss:$8 sps:$4 sm:$0xff]   ;;  %v4978_v32 = vld [vmem:[%s7090_s2 + $0xf0] ss:$8 sps:$4 sm:$0xff]   ;;  %v4984_v33 = vld [vmem:[%s7090_s2 + $0x104] ss:$8 sps:$4 sm:$0xff]  }
  0x28   : > { %v4979_v34 = vld [vmem:[%s5764_s29] ss:$28 sps:$4 sm:$0xff]   ;;  %v4985_v39 = vld [vmem:[%s7090_s2 + $0x110] ss:$8 sps:$4 sm:$0xff]   ;;  %v4990_v40 = vld [vmem:[%s7090_s2 + $0x124] ss:$8 sps:$4 sm:$0xff]  }
  0x29   : > { %v4982_v35 = vld [vmem:[%s7090_s2 + $0x100] ss:$8 sps:$4 sm:$0xff]   ;;  %v5012_v36 = vld [vmem:[%s5764_s29 + $0x3c] ss:$28 sps:$4 sm:$0xff]   ;;  %v5021_v43 = vld [vmem:[%s5764_s29 + $0x74] ss:$28 sps:$4 sm:$0xff]  }
  0x2a   : > { %1376 = vmatpush1.bf16.msra.mxu0 %v4942_v7  ;;  %v4987_v37 = vld [vmem:[%s7090_s2 + $0x114] ss:$8 sps:$4 sm:$0xff]   ;;  %v4988_v42 = vld [vmem:[%s7090_s2 + $0x120] ss:$8 sps:$4 sm:$0xff]   ;;  %v5096_v45 = vld [vmem:[%s7090_s2 + $0x304] ss:$8 sps:$4 sm:$0xff]  }
  0x2b   : > { %1377 = vmatprep.subr.bf16.mxu0 %v4943_v8  ;;  %v5017_v41 = vld [vmem:[%s5764_s29 + $0x38] ss:$28 sps:$4 sm:$0xff]   ;;  %v4996_v47 = vld [vmem:[%s7090_s2 + $0x144] ss:$8 sps:$4 sm:$0xff]   ;;  %v5101_v48 = vld [vmem:[%s7090_s2 + $0x300] ss:$8 sps:$4 sm:$0xff]   ;;  %1588 = vmatprep.subr.bf16.mxu1 %v5096_v45 }
  0x2c   : > { %v4993_v44 = vld [vmem:[%s7090_s2 + $0x134] ss:$8 sps:$4 sm:$0xff]   ;;  %v4991_v46 = vld [vmem:[%s7090_s2 + $0x130] ss:$8 sps:$4 sm:$0xff]   ;;  %v4994_v50 = vld [vmem:[%s7090_s2 + $0x140] ss:$8 sps:$4 sm:$0xff]   ;;  %1589 = vmatpush1.bf16.msra.mxu1 %v5101_v48 }
  0x2d   : > { %v5026_v49 = vld [vmem:[%s5764_s29 + $0x70] ss:$28 sps:$4 sm:$0xff]   ;;  %v5105_v51 = vld [vmem:[%s5764_s29 + $0x18] ss:$28 sps:$4 sm:$0xff]   ;;  %v5035_v56 = vld [vmem:[%s5764_s29 + $0xa8] ss:$28 sps:$4 sm:$0xff]   ;;  %4608 = vmatprep.subr.bf16.mxu1 %v5118_v61 }
  0x2e   : > { %1378 = vmatpush1.bf16.msra.mxu0 %v4945_v9  ;;  %v5030_v52 = vld [vmem:[%s5764_s29 + $0xac] ss:$28 sps:$4 sm:$0xff]   ;;  %v4999_v53 = vld [vmem:[%s7090_s2 + $0x154] ss:$8 sps:$4 sm:$0xff]   ;;  %v4997_v54 = vld [vmem:[%s7090_s2 + $0x150] ss:$8 sps:$4 sm:$0xff]  }
  0x2f   : > { %1379 = vmatprep.subr.bf16.mxu0 %v4946_v10  ;;  %4352 = vmatmul.mubr.msk.bf16.vlgmr.msra.gmra.mrb[0].mxu1 %vm1356_vm0, %v5105_v51  ;;  %v5002_v55 = vld [vmem:[%s7090_s2 + $0x164] ss:$8 sps:$4 sm:$0xff]   ;;  %v5000_v58 = vld [vmem:[%s7090_s2 + $0x160] ss:$8 sps:$4 sm:$0xff]   ;;  %v5005_v60 = vld [vmem:[%s7090_s2 + $0x174] ss:$8 sps:$4 sm:$0xff]  }
  0x30   : > { %1630 = vmatprep.mubr.bf16.mxu1 %v5584_v38  ;;  %v5108_v57 = vld [vmem:[%s5764_s29 + $0x50] ss:$28 sps:$4 sm:$0xff]   ;;  %v5113_v2 = vld [vmem:[%s5764_s29 + $0x88] ss:$28 sps:$4 sm:$0xff]   ;;  %4609 = vmatpush3.bf16.msra.mxu1 %v5119_v62  ;;  %v5011_v5 = vld [vmem:[%s7090_s2 + $0x194] ss:$8 sps:$4 sm:$0xff]  }
  0x31   : > { %v5041_v59 = vld [vmem:[%s5764_s29 + $0xc] ss:$28 sps:$4 sm:$0xff]   ;;  %v5003_v63 = vld [vmem:[%s7090_s2 + $0x170] ss:$8 sps:$4 sm:$0xff]   ;;  %4610 = vmatprep.subr.bf16.mxu1 %v5120_v0  ;;  %v5126_v13 = vld [vmem:[%s7059_s4 + $0x60] sm:$0xff]   ;;  %s4822_s23 = smul.u32 224, %s6193_s16 }
  0x32   : > { %1380 = vmatpush1.bf16.msra.mxu0 %v4948_v11  ;;  %v5008_v1 = vld [vmem:[%s7090_s2 + $0x184] ss:$8 sps:$4 sm:$0xff]   ;;  %v5006_v3 = vld [vmem:[%s7090_s2 + $0x180] ss:$8 sps:$4 sm:$0xff]   ;;  %v5122_v6 = vld [vmem:[%s7059_s4 + $0x50] sm:$0xff]   ;;  %s3914_s26 = ssub.s32 (%p5707_p5), 25, %s5733_s30 }
  0x33   : > { %1381 = vmatprep.subr.bf16.mxu0 %v4949_v12  ;;  %v5121_v4 = vld [vmem:[%s7059_s4 + $0x8] sm:$0xff]   ;;  %v5123_v7 = vld [vmem:[%s7059_s4 + $0x10] sm:$0xff]   ;;  %v5124_v8 = vld [vmem:[%s7059_s4 + $0x58] sm:$0xff]   ;;  %s6854_s27 = scalar_lea.vmem [#allocation2], %s4822_s23  ;;  %p3915_p11 = scmp.lt.s32.totalorder (%p5707_p5), %s3914_s26, 8 }
  0x34   : > { %v5009_v9 = vld [vmem:[%s7090_s2 + $0x190] ss:$8 sps:$4 sm:$0xff]   ;;  %4611 = vmatpush3.bf16.msra.mxu1 %v5121_v4  ;;  %v5016_v10 = vld [vmem:[%s7090_s2 + $0x1a4] ss:$8 sps:$4 sm:$0xff]   ;;  %v5117_v11 = vld [vmem:[%s5764_s29 + $0xc0] ss:$28 sps:$4 sm:$0xff]  }
  0x35   : > { %4612 = vmatprep.subr.bf16.mxu1 %v5122_v6  ;;  %v5125_v12 = vld [vmem:[%s7059_s4 + $0x18] sm:$0xff]   ;;  %v5062_v45 = vld [vmem:[%s7090_s2 + $0x264] ss:$8 sps:$4 sm:$0xff]   ;;  %v5104_v48 = vld [vmem:[%s5764_s29 + $0x14] ss:$28 sps:$4 sm:$0xff]  }
  0x36   : > { %1382 = vmatpush1.bf16.msra.mxu0 %v4951_v14  ;;  %v5014_v14 = vld [vmem:[%s7090_s2 + $0x1a0] ss:$8 sps:$4 sm:$0xff]   ;;  %v5068_v51 = vld [vmem:[%s7090_s2 + $0x284] ss:$8 sps:$4 sm:$0xff]   ;;  %v5089_v61 = vld [vmem:[%s7090_s2 + $0x2d4] ss:$8 sps:$4 sm:$0xff]  }
  0x37   : > { %1383 = vmatprep.subr.bf16.mxu0 %v4952_v15  ;;  %4353 = vmatmul.mubr.msk.bf16.gmra.mrb[4].mxu1 %vm1356_vm0, %v5108_v57  ;;  %v5020_v15 = vld [vmem:[%s7090_s2 + $0x1b4] ss:$8 sps:$4 sm:$0xff]   ;;  %v5087_v62 = vld [vmem:[%s7090_s2 + $0x2d0] ss:$8 sps:$4 sm:$0xff]   ;;  %v5093_v0 = vld [vmem:[%s7090_s2 + $0x2e0] ss:$8 sps:$4 sm:$0xff]  }
  0x38   : > { %1640 = vmatprep.mubr.bf16.mxu1 %v5584_v38  ;;  %4613 = vmatpush3.bf16.msra.mxu1 %v5123_v7  ;;  %v5080_v57 = vld [vmem:[%s7090_s2 + $0x2b4] ss:$8 sps:$4 sm:$0xff]   ;;  %v5106_v4 = vld [vmem:[%s5764_s29 + $0x4c] ss:$28 sps:$4 sm:$0xff]   ;;  %v5110_v6 = vld [vmem:[%s5764_s29 + $0x84] ss:$28 sps:$4 sm:$0xff]  }
  0x39   : > { %4614 = vmatprep.subr.bf16.mxu1 %v5124_v8  ;;  %v5112_v7 = vld [vmem:[%s5764_s29 + $0x80] ss:$28 sps:$4 sm:$0xff]  }
  0x3a   : > { %1384 = vmatpush1.bf16.msra.mxu0 %v4954_v16  ;;  %v5127_v16 = vld [vmem:[%s7059_s4 + $0x20] sm:$0xff]   ;;  %v5114_v8 = vld [vmem:[%s5764_s29 + $0xbc] ss:$28 sps:$4 sm:$0xff]  }
  0x3b   : > { %1385 = vmatprep.subr.bf16.mxu0 %v4955_v17  ;;  %v5018_v17 = vld [vmem:[%s7090_s2 + $0x1b0] ss:$8 sps:$4 sm:$0xff]  }
  0x3c   : > { %4615 = vmatpush3.bf16.msra.mxu1 %v5125_v12  ;;  %v5130_v12 = vld [vmem:[%s7059_s4 + $0x70] sm:$0xff]  }
  0x3d   : > { %4616 = vmatprep.subr.bf16.mxu1 %v5126_v13  ;;  %v5131_v13 = vld [vmem:[%s7059_s4 + $0x30] sm:$0xff]  }
  0x3e   : > { %1386 = vmatpush1.bf16.msra.mxu0 %v4957_v18  ;;  %v5025_v18 = vld [vmem:[%s7090_s2 + $0x1c4] ss:$8 sps:$4 sm:$0xff]  }
  0x3f   : > { %1387 = vmatprep.subr.bf16.mxu0 %v4958_v19  ;;  %4354 = vmatmul.mubr.msk.bf16.gmra.mrb[8].mxu1 %vm1356_vm0, %v5113_v2  ;;  %v5023_v19 = vld [vmem:[%s7090_s2 + $0x1c0] ss:$8 sps:$4 sm:$0xff]   ;;  %v5098_v2 = vld [vmem:[%s7090_s2 + $0x2f0] ss:$8 sps:$4 sm:$0xff]  }
  0x40   : > { %1650 = vmatprep.mubr.bf16.mxu1 %v5584_v38  ;;  %4617 = vmatpush3.bf16.msra.mxu1 %v5127_v16 }
  0x42   : > { %1388 = vmatpush1.bf16.msra.mxu0 %v4960_v20  ;;  %v5029_v20 = vld [vmem:[%s7090_s2 + $0x1d4] ss:$8 sps:$4 sm:$0xff]  }
  0x43   : > { %1389 = vmatprep.subr.bf16.mxu0 %v4961_v21  ;;  %v5027_v21 = vld [vmem:[%s7090_s2 + $0x1d0] ss:$8 sps:$4 sm:$0xff]  }
  0x46   : > { %1390 = vmatpush1.bf16.msra.mxu0 %v4963_v22  ;;  %v5034_v22 = vld [vmem:[%s7090_s2 + $0x1e4] ss:$8 sps:$4 sm:$0xff]  }
  0x47   : > { %1391 = vmatprep.subr.bf16.mxu0 %v4964_v23  ;;  %4355 = vmatmul.mubr.msk.bf16.gmra.mrb[12].mxu1 %vm1356_vm0, %v5117_v11  ;;  %v5032_v23 = vld [vmem:[%s7090_s2 + $0x1e0] ss:$8 sps:$4 sm:$0xff]  }
  0x48   : > { %v5129_v11 = vld [vmem:[%s7059_s4 + $0x28] sm:$0xff]  }
  0x4a   : > { %1392 = vmatpush1.bf16.msra.mxu0 %v4966_v24  ;;  %v5038_v24 = vld [vmem:[%s7090_s2 + $0x1f4] ss:$8 sps:$4 sm:$0xff]  }
  0x4b   : > { %1393 = vmatprep.subr.bf16.mxu0 %v4967_v25  ;;  %v5036_v25 = vld [vmem:[%s7090_s2 + $0x1f0] ss:$8 sps:$4 sm:$0xff]  }
  0x4e   : > { %1394 = vmatpush1.bf16.msra.mxu0 %v4969_v26  ;;  %v5044_v26 = vld [vmem:[%s7090_s2 + $0x204] ss:$8 sps:$4 sm:$0xff]  }
  0x4f   : > { %1395 = vmatprep.subr.bf16.mxu0 %v4970_v27  ;;  %v5039_v27 = vld [vmem:[%s5764_s29 + $0x8] ss:$28 sps:$4 sm:$0xff]  }
  0x52   : > { %1396 = vmatpush1.bf16.msra.mxu0 %v4972_v28  ;;  %v5042_v28 = vld [vmem:[%s7090_s2 + $0x200] ss:$8 sps:$4 sm:$0xff]  }
  0x53   : > { %1397 = vmatprep.subr.bf16.mxu0 %v4973_v29  ;;  %v5072_v29 = vld [vmem:[%s5764_s29 + $0x44] ss:$28 sps:$4 sm:$0xff]  }
  0x56   : > { %1398 = vmatpush1.bf16.msra.mxu0 %v4975_v30  ;;  %v5047_v30 = vld [vmem:[%s7090_s2 + $0x214] ss:$8 sps:$4 sm:$0xff]  }
  0x57   : > { %1399 = vmatprep.subr.bf16.mxu0 %v4976_v31  ;;  %v5045_v31 = vld [vmem:[%s7090_s2 + $0x210] ss:$8 sps:$4 sm:$0xff]  }
  0x5a   : > { %1400 = vmatpush1.bf16.msra.mxu0 %v4978_v32  ;;  %v5050_v32 = vld [vmem:[%s7090_s2 + $0x224] ss:$8 sps:$4 sm:$0xff]  }
  0x5b   : > { %1442 = vmatprep.subr.bf16.mxu0 %v4984_v33  ;;  %v5074_v33 = vld [vmem:[%s5764_s29 + $0x40] ss:$28 sps:$4 sm:$0xff]  }
  0x5d   : > { %1402 = vmatmul.mubr.bf16.vlgmr.msra.gmra.mrb[0].mxu0 %v4979_v34  ;;  %v5048_v34 = vld [vmem:[%s7090_s2 + $0x220] ss:$8 sps:$4 sm:$0xff]  }
  0x5e   : > { %1443 = vmatpush1.bf16.msra.mxu0 %v4982_v35  ;;  %1411 = vmatprep.mubr.bf16.mxu0 %v5012_v36  ;;  %v5081_v35 = vld [vmem:[%s5764_s29 + $0x7c] ss:$28 sps:$4 sm:$0xff]  }
  0x5f   : > { %1444 = vmatprep.subr.bf16.mxu0 %v4987_v37  ;;  %v5053_v36 = vld [vmem:[%s7090_s2 + $0x234] ss:$8 sps:$4 sm:$0xff]   ;;  %v5051_v37 = vld [vmem:[%s7090_s2 + $0x230] ss:$8 sps:$4 sm:$0xff]  }
  0x62   : > { %1445 = vmatpush1.bf16.msra.mxu0 %v4985_v39  ;;  %v5056_v39 = vld [vmem:[%s7090_s2 + $0x244] ss:$8 sps:$4 sm:$0xff]  }
  0x63   : > { %1446 = vmatprep.subr.bf16.mxu0 %v4990_v40  ;;  %v5083_v40 = vld [vmem:[%s5764_s29 + $0x78] ss:$28 sps:$4 sm:$0xff]  }
  0x65   : > { %1412 = vmatmul.mubr.bf16.gmra.mrb[4].mxu0 %v5017_v41  ;;  %v5054_v41 = vld [vmem:[%s7090_s2 + $0x240] ss:$8 sps:$4 sm:$0xff]  }
  0x66   : > { %1447 = vmatpush1.bf16.msra.mxu0 %v4988_v42  ;;  %1421 = vmatprep.mubr.bf16.mxu0 %v5021_v43  ;;  %v5090_v42 = vld [vmem:[%s5764_s29 + $0xb4] ss:$28 sps:$4 sm:$0xff]  }
  0x67   : > { %1448 = vmatprep.subr.bf16.mxu0 %v4993_v44  ;;  %v5059_v43 = vld [vmem:[%s7090_s2 + $0x254] ss:$8 sps:$4 sm:$0xff]   ;;  %v5057_v44 = vld [vmem:[%s7090_s2 + $0x250] ss:$8 sps:$4 sm:$0xff]  }
  0x6a   : > { %1449 = vmatpush1.bf16.msra.mxu0 %v4991_v46  ;;  %v5092_v46 = vld [vmem:[%s5764_s29 + $0xb0] ss:$28 sps:$4 sm:$0xff]  }
  0x6b   : > { %1450 = vmatprep.subr.bf16.mxu0 %v4996_v47  ;;  %v5060_v47 = vld [vmem:[%s7090_s2 + $0x260] ss:$8 sps:$4 sm:$0xff]  }
  0x6d   : > { %1422 = vmatmul.mubr.bf16.gmra.mrb[8].mxu0 %v5026_v49  ;;  %v5065_v49 = vld [vmem:[%s7090_s2 + $0x274] ss:$8 sps:$4 sm:$0xff]  }
  0x6e   : > { %1451 = vmatpush1.bf16.msra.mxu0 %v4994_v50  ;;  %1431 = vmatprep.mubr.bf16.mxu0 %v5030_v52  ;;  %v5063_v50 = vld [vmem:[%s7090_s2 + $0x270] ss:$8 sps:$4 sm:$0xff]   ;;  %v5066_v52 = vld [vmem:[%s7090_s2 + $0x280] ss:$8 sps:$4 sm:$0xff]  }
  0x6f   : > { %1452 = vmatprep.subr.bf16.mxu0 %v4999_v53  ;;  %v5071_v53 = vld [vmem:[%s7090_s2 + $0x294] ss:$8 sps:$4 sm:$0xff]  }
  0x72   : > { %1453 = vmatpush1.bf16.msra.mxu0 %v4997_v54  ;;  %v5069_v54 = vld [vmem:[%s7090_s2 + $0x290] ss:$8 sps:$4 sm:$0xff]  }
  0x73   : > { %1454 = vmatprep.subr.bf16.mxu0 %v5002_v55  ;;  %v5077_v55 = vld [vmem:[%s7090_s2 + $0x2a4] ss:$8 sps:$4 sm:$0xff]  }
  0x75   : > { %1432 = vmatmul.mubr.bf16.gmra.mrb[12].mxu0 %v5035_v56  ;;  %v5075_v56 = vld [vmem:[%s7090_s2 + $0x2a0] ss:$8 sps:$4 sm:$0xff]  }
  0x76   : > { %1455 = vmatpush1.bf16.msra.mxu0 %v5000_v58  ;;  %1474 = vmatprep.mubr.bf16.mxu0 %v5041_v59  ;;  %v5078_v58 = vld [vmem:[%s7090_s2 + $0x2b0] ss:$8 sps:$4 sm:$0xff]   ;;  %v5086_v59 = vld [vmem:[%s7090_s2 + $0x2c4] ss:$8 sps:$4 sm:$0xff]  }
  0x77   : > { %1456 = vmatprep.subr.bf16.mxu0 %v5005_v60  ;;  %v5084_v60 = vld [vmem:[%s7090_s2 + $0x2c0] ss:$8 sps:$4 sm:$0xff]  }
  0x7a   : > { %1457 = vmatpush1.bf16.msra.mxu0 %v5003_v63  ;;  %v5095_v63 = vld [vmem:[%s7090_s2 + $0x2e4] ss:$8 sps:$4 sm:$0xff]  }
  0x7b   : > { %1458 = vmatprep.subr.bf16.mxu0 %v5008_v1  ;;  %v5100_v1 = vld [vmem:[%s7090_s2 + $0x2f4] ss:$8 sps:$4 sm:$0xff]  }
  0x7e   : > { %1459 = vmatpush1.bf16.msra.mxu0 %v5006_v3  ;;  %v5102_v3 = vld [vmem:[%s5764_s29 + $0x10] ss:$28 sps:$4 sm:$0xff]  }
  0x7f   : > { %1460 = vmatprep.subr.bf16.mxu0 %v5011_v5  ;;  %v5109_v5 = vld [vmem:[%s5764_s29 + $0x48] ss:$28 sps:$4 sm:$0xff]  }
  0x82   : > { %1461 = vmatpush1.bf16.msra.mxu0 %v5009_v9  ;;  %v5116_v9 = vld [vmem:[%s5764_s29 + $0xb8] ss:$28 sps:$4 sm:$0xff]   ;;  %s5585_s29 = smov 96  }
  0x83   : > { %1462 = vmatprep.subr.bf16.mxu0 %v5016_v10  ;;  %v5128_v10 = vld [vmem:[%s7059_s4 + $0x68] sm:$0xff]  }
  0x84   : > { %4618 = vmatprep.subr.bf16.mxu1 %v5128_v10  ;;  %v5136_v10 = vld [vmem:[%s7061_s6 + $0x10] sm:$0xff]  }
  0x85   : > { %4619 = vmatpush3.bf16.msra.mxu1 %v5129_v11 }
  0x86   : > { %1463 = vmatpush1.bf16.msra.mxu0 %v5014_v14  ;;  %4620 = vmatprep.subr.bf16.mxu1 %v5130_v12  ;;  %v5132_v14 = vld [vmem:[%s7059_s4 + $0x78] sm:$0xff]  }
  0x87   : > { %1464 = vmatprep.subr.bf16.mxu0 %v5020_v15  ;;  %v5133_v15 = vld [vmem:[%s7059_s4 + $0x38] sm:$0xff]  }
  0x89   : > { %4621 = vmatpush3.bf16.msra.mxu1 %v5131_v13 }
  0x8a   : > { %1465 = vmatpush1.bf16.msra.mxu0 %v5018_v17  ;;  %4622 = vmatprep.subr.bf16.mxu1 %v5132_v14 }
  0x8b   : > { %1466 = vmatprep.subr.bf16.mxu0 %v5025_v18 }
  0x8d   : > { %4623 = vmatpush3.bf16.msra.mxu1 %v5133_v15 }
  0x8e   : > { %1467 = vmatpush1.bf16.msra.mxu0 %v5023_v19 }
  0x8f   : > { %1468 = vmatprep.subr.bf16.mxu0 %v5029_v20 }
  0x92   : > { %1469 = vmatpush1.bf16.msra.mxu0 %v5027_v21 }
  0x93   : > { %1470 = vmatprep.subr.bf16.mxu0 %v5034_v22 }
  0x96   : > { %1471 = vmatpush1.bf16.msra.mxu0 %v5032_v23 }
  0x97   : > { %1472 = vmatprep.subr.bf16.mxu0 %v5038_v24 }
  0x9a   : > { %1473 = vmatpush1.bf16.msra.mxu0 %v5036_v25 }
  0x9b   : > { %1515 = vmatprep.subr.bf16.mxu0 %v5044_v26 }
  0x9d   : > { %1475 = vmatmul.mubr.bf16.vlgmr.msra.gmra.mrb[0].mxu0 %v5039_v27 }
  0x9e   : > { %1516 = vmatpush1.bf16.msra.mxu0 %v5042_v28  ;;  %1484 = vmatprep.mubr.bf16.mxu0 %v5072_v29  ;;  %v5134_v28 = vld [vmem:[%s7061_s6] sm:$0xff]  }
  0x9f   : > { %1517 = vmatprep.subr.bf16.mxu0 %v5047_v30  ;;  %4706 = vmatprep.subr.bf16.mxu1 %v5134_v28 }
  0xa2   : > { %1518 = vmatpush1.bf16.msra.mxu0 %v5045_v31 }
  0xa3   : > { %1519 = vmatprep.subr.bf16.mxu0 %v5050_v32 }
  0xa5   : > { %1485 = vmatmul.mubr.bf16.gmra.mrb[4].mxu0 %v5074_v33  ;;  %v716_v33 = vlaneseq }
  0xa6   : > { %1520 = vmatpush1.bf16.msra.mxu0 %v5048_v34  ;;  %1494 = vmatprep.mubr.bf16.mxu0 %v5081_v35 }
  0xa7   : > { %1521 = vmatprep.subr.bf16.mxu0 %v5053_v36  ;;  %v6127_v34 = vshrl.u32 %v716_v33, 7  ;;  %v714_v36 = vld [vmem:[%s7058_s3] sm:$0x3] }
  0xa9   : > { %v6130_v35 = vsub.s32 0, %v6127_v34 }
  0xaa   : > { %1522 = vmatpush1.bf16.msra.mxu0 %v5051_v37  ;;  %v6136_v37 = vsub.s32 1, %v6127_v34 }
  0xab   : > { %1523 = vmatprep.subr.bf16.mxu0 %v5056_v39  ;;  %v6139_v39 = vrot.slane %v714_v36, %v6130_v35 }
  0xad   : > { %1495 = vmatmul.mubr.bf16.gmra.mrb[8].mxu0 %v5083_v40  ;;  %v6142_v40 = vrot.slane %v714_v36, %v6136_v37 }
  0xae   : > { %1524 = vmatpush1.bf16.msra.mxu0 %v5054_v41  ;;  %1504 = vmatprep.mubr.bf16.mxu0 %v5090_v42 }
  0xaf   : > { %1525 = vmatprep.subr.bf16.mxu0 %v5059_v43 }
  0xb2   : > { %1526 = vmatpush1.bf16.msra.mxu0 %v5057_v44 }
  0xb3   : > { %1527 = vmatprep.subr.bf16.mxu0 %v5062_v45 }
  0xb5   : > { %1505 = vmatmul.mubr.bf16.gmra.mrb[12].mxu0 %v5092_v46 }
  0xb6   : > { %1528 = vmatpush1.bf16.msra.mxu0 %v5060_v47  ;;  %1547 = vmatprep.mubr.bf16.mxu0 %v5104_v48 }
  0xb7   : > { %1529 = vmatprep.subr.bf16.mxu0 %v5065_v49 }
  0xba   : > { %1530 = vmatpush1.bf16.msra.mxu0 %v5063_v50 }
  0xbb   : > { %1531 = vmatprep.subr.bf16.mxu0 %v5068_v51 }
  0xbe   : > { %1532 = vmatpush1.bf16.msra.mxu0 %v5066_v52 }
  0xbf   : > { %1533 = vmatprep.subr.bf16.mxu0 %v5071_v53 }
  0xc2   : > { %1534 = vmatpush1.bf16.msra.mxu0 %v5069_v54 }
  0xc3   : > { %1535 = vmatprep.subr.bf16.mxu0 %v5077_v55 }
  0xc6   : > { %1536 = vmatpush1.bf16.msra.mxu0 %v5075_v56 }
  0xc7   : > { %1537 = vmatprep.subr.bf16.mxu0 %v5080_v57 }
  0xca   : > { %1538 = vmatpush1.bf16.msra.mxu0 %v5078_v58 }
  0xcb   : > { %1539 = vmatprep.subr.bf16.mxu0 %v5086_v59 }
  0xce   : > { %1540 = vmatpush1.bf16.msra.mxu0 %v5084_v60 }
  0xcf   : > { %1541 = vmatprep.subr.bf16.mxu0 %v5089_v61 }
  0xd2   : > { %1542 = vmatpush1.bf16.msra.mxu0 %v5087_v62 }
  0xd3   : > { %1543 = vmatprep.subr.bf16.mxu0 %v5095_v63 }
  0xd6   : > { %1544 = vmatpush1.bf16.msra.mxu0 %v5093_v0 }
  0xd7   : > { %1545 = vmatprep.subr.bf16.mxu0 %v5100_v1 }
  0xda   : > { %1546 = vmatpush1.bf16.msra.mxu0 %v5098_v2 }
  0xdd   : > { %1548 = vmatmul.mubr.bf16.vlgmr.msra.gmra.mrb[0].mxu0 %v5102_v3  ;;  %v5135_v3 = vld [vmem:[%s7061_s6 + $0x8] sm:$0xff]  }
  0xde   : > { %1557 = vmatprep.mubr.bf16.mxu0 %v5106_v4 }
  0xe5   : > { %1558 = vmatmul.mubr.bf16.gmra.mrb[4].mxu0 %v5109_v5 }
  0xe6   : > { %1567 = vmatprep.mubr.bf16.mxu0 %v5110_v6 }
  0xed   : > { %1568 = vmatmul.mubr.bf16.gmra.mrb[8].mxu0 %v5112_v7 }
  0xee   : > { %1577 = vmatprep.mubr.bf16.mxu0 %v5114_v8 }
  0xf5   : > { %1578 = vmatmul.mubr.bf16.gmra.mrb[12].mxu0 %v5116_v9 }
 0x102   : > { %v1622_v16 = vpop.f32.mrb[0].mxu1 }
 0x103   : > { %v1624_v17 = vpop.f32.mrb[1].mxu1 }
 0x104   : > { %v1626_v18 = vpop.f32.mrb[2].mxu1 }
 0x105   : > { %v1628_v19 = vpop.f32.mrb[3].mxu1 }
 0x10a   : > { %v1632_v20 = vpop.f32.mrb[4].mxu1 }
 0x10b   : > { %v1634_v21 = vpop.f32.mrb[5].mxu1 }
 0x10c   : > { %v1636_v22 = vpop.f32.mrb[6].mxu1 }
 0x10d   : > { %v1638_v23 = vpop.f32.mrb[7].mxu1 }
 0x112   : > { %v6108_v24 = vpop.f32.mrb[8].mxu1 }
 0x113   : > { %v6110_v25 = vpop.f32.mrb[9].mxu1 }
 0x114   : > { %v6112_v26 = vpop.f32.mrb[10].mxu1 }
 0x115   : > { %v6114_v27 = vpop.f32.mrb[11].mxu1 }
 0x11a   : > { %v6119_v29 = vpop.f32.mrb[12].mxu1 }
 0x11b   : > { %v6121_v30 = vpop.f32.mrb[13].mxu1 }
 0x11c   : > { %v6123_v31 = vpop.f32.mrb[14].mxu1 }
 0x11d   : > { %v6125_v32 = vpop.f32.mrb[15].mxu1 }
 0x1b0   : > { %v1549_v41 = vpop.f32.mrb[0].mxu0 }
 0x1b1   : > { %v4758_v42 = vadd.f32 %v1549_v41, %v6139_v39  ;;  %v1551_v43 = vpop.f32.mrb[1].mxu0 }
 0x1b2   : > { %v4760_v44 = vadd.f32 %v1551_v43, %v6142_v40  ;;  %v1553_v45 = vpop.f32.mrb[2].mxu0 }
 0x1b3   : > { %v4759_v46 = vadd.f32 %v4758_v42, %v1622_v16  ;;  %v4762_v47 = vadd.f32 %v1553_v45, %v6139_v39  ;;  %v1555_v48 = vpop.f32.mrb[3].mxu0 }
 0x1b4   : > { %v4761_v49 = vadd.f32 %v4760_v44, %v1624_v17  ;;  %v4764_v50 = vadd.f32 %v1555_v48, %v6142_v40 }
 0x1b5   : > { %v4763_v51 = vadd.f32 %v4762_v47, %v1626_v18  ;;  %v1661_v53 = vmax.f32 %v4759_v46, 0.0 }
 0x1b6   : > { %v4765_v52 = vadd.f32 %v4764_v50, %v1628_v19  ;;  %v1662_v55 = vmax.f32 %v4761_v49, 0.0 }
 0x1b7   : > { %v1663_v54 = vmax.f32 %v4763_v51, 0.0 }
 0x1b8   : > { %v1664_v56 = vmax.f32 %v4765_v52, 0.0  ;;  %v1559_v57 = vpop.f32.mrb[4].mxu0 }
 0x1b9   : > { %v1677_v58 = vpack.c.bf16 %v1663_v54, %v1661_v53  ;;  %v4766_v59 = vadd.f32 %v1559_v57, %v6139_v39  ;;  %v1561_v60 = vpop.f32.mrb[5].mxu0 }
 0x1ba   : > { %v4768_v61 = vadd.f32 %v1561_v60, %v6142_v40  ;;  %v1563_v62 = vpop.f32.mrb[6].mxu0  ;;  %v1678_v63 = vpack.c.bf16 %v1664_v56, %v1662_v55 }
 0x1bb   : > { %v4767_v0 = vadd.f32 %v4766_v59, %v1632_v20  ;;  %v4770_v1 = vadd.f32 %v1563_v62, %v6139_v39  ;;  %v1565_v2 = vpop.f32.mrb[7].mxu0 }
 0x1bc   : > { %v4769_v4 = vadd.f32 %v4768_v61, %v1634_v21  ;;  %v4772_v5 = vadd.f32 %v1565_v2, %v6142_v40  ;;  %1852 = vmatprep.mubr.bf16.mxu1 %v1678_v63  ;;  %v4356_v61 = vld [vmem:[%s7060_s5] ss:$0 sm:$0xff] }
 0x1bd   : > { %v4771_v6 = vadd.f32 %v4770_v1, %v1636_v22  ;;  %1853 = vmatmul.mubr.bf16.vlgmr.msra.gmra.mrb[16].mxu1 %v1677_v58  ;;  %v1665_v8 = vmax.f32 %v4767_v0, 0.0 }
 0x1be   : > { %v4773_v7 = vadd.f32 %v4772_v5, %v1638_v23  ;;  %4707 = vmatpush3.bf16.msra.mxu1 %v5134_v28  ;;  %v1666_v11 = vmax.f32 %v4769_v4, 0.0 }
 0x1bf   : > { %v1667_v9 = vmax.f32 %v4771_v6, 0.0  ;;  %4708 = vmatprep.subr.bf16.mxu1 %v5135_v3 }
 0x1c0   : > { %v1668_v12 = vmax.f32 %v4773_v7, 0.0  ;;  %v1569_v13 = vpop.f32.mrb[8].mxu0 }
 0x1c1   : > { %v4774_v14 = vadd.f32 %v1569_v13, %v6139_v39  ;;  %v1571_v15 = vpop.f32.mrb[9].mxu0  ;;  %v1679_v16 = vpack.c.bf16 %v1667_v9, %v1665_v8 }
 0x1c2   : > { %v4776_v17 = vadd.f32 %v1571_v15, %v6142_v40  ;;  %v1573_v18 = vpop.f32.mrb[10].mxu0  ;;  %v1680_v19 = vpack.c.bf16 %v1668_v12, %v1666_v11  ;;  %4709 = vmatpush3.bf16.msra.mxu1 %v5135_v3 }
 0x1c3   : > { %v4778_v20 = vadd.f32 %v1573_v18, %v6139_v39  ;;  %v4775_v21 = vadd.f32 %v4774_v14, %v6108_v24  ;;  %v1575_v22 = vpop.f32.mrb[11].mxu0  ;;  %4710 = vmatprep.subr.bf16.mxu1 %v5136_v10 }
 0x1c4   : > { %v4780_v23 = vadd.f32 %v1575_v22, %v6142_v40  ;;  %v4777_v28 = vadd.f32 %v4776_v17, %v6110_v25  ;;  %1860 = vmatprep.mubr.bf16.mxu1 %v1680_v19 }
 0x1c5   : > { %v4779_v33 = vadd.f32 %v4778_v20, %v6112_v26  ;;  %1861 = vmatmul.mubr.bf16.gmra.mrb[20].mxu1 %v1679_v16  ;;  %v1669_v41 = vmax.f32 %v4775_v21, 0.0 }
 0x1c6   : > { %v4781_v36 = vadd.f32 %v4780_v23, %v6114_v27  ;;  %4711 = vmatpush3.bf16.msra.mxu1 %v5136_v10  ;;  %v1670_v43 = vmax.f32 %v4777_v28, 0.0 }
 0x1c7   : > { %v1671_v42 = vmax.f32 %v4779_v33, 0.0 }
 0x1c8   : > { %v1672_v44 = vmax.f32 %v4781_v36, 0.0  ;;  %v1579_v45 = vpop.f32.mrb[12].mxu0 }
 0x1c9   : > { %v1681_v46 = vpack.c.bf16 %v1671_v42, %v1669_v41  ;;  %v4782_v24 = vadd.f32 %v1579_v45, %v6139_v39  ;;  %v1581_v47 = vpop.f32.mrb[13].mxu0 }
 0x1ca   : > { %v1682_v48 = vpack.c.bf16 %v1672_v44, %v1670_v43  ;;  %v4784_v49 = vadd.f32 %v1581_v47, %v6142_v40  ;;  %v1583_v25 = vpop.f32.mrb[14].mxu0 }
 0x1cb   : > { %v4786_v50 = vadd.f32 %v1583_v25, %v6139_v39  ;;  %v4783_v26 = vadd.f32 %v4782_v24, %v6119_v29  ;;  %v1585_v51 = vpop.f32.mrb[15].mxu0  ;;  %v5137_v29 = vld [vmem:[%s7061_s6 + $0x18] sm:$0xff]  }
 0x1cc   : > { %v4788_v27 = vadd.f32 %v1585_v51, %v6142_v40  ;;  %v4785_v52 = vadd.f32 %v4784_v49, %v6121_v30  ;;  %1868 = vmatprep.mubr.bf16.mxu1 %v1682_v48  ;;  %4712 = vmatprep.subr.bf16.mxu1 %v5137_v29  ;;  %v5138_v30 = vld [vmem:[%s7061_s6 + $0x20] sm:$0xff]   ;;  %v5141_v39 = vld [vmem:[%s7061_s6 + $0x38] sm:$0xff]  }
 0x1cd   : > { %v4787_v53 = vadd.f32 %v4786_v50, %v6123_v31  ;;  %1869 = vmatmul.mubr.bf16.gmra.mrb[24].mxu1 %v1681_v46  ;;  %v1673_v55 = vmax.f32 %v4783_v26, 0.0  ;;  %v5139_v31 = vld [vmem:[%s7061_s6 + $0x28] sm:$0xff]  }
 0x1ce   : > { %v4789_v54 = vadd.f32 %v4788_v27, %v6125_v32  ;;  %v1674_v57 = vmax.f32 %v4785_v52, 0.0  ;;  %4713 = vmatpush3.bf16.msra.mxu1 %v5137_v29  ;;  %v5140_v32 = vld [vmem:[%s7061_s6 + $0x30] sm:$0xff]   ;;  %v5142_v27 = vld [vmem:[%s7063_s8] sm:$0xff]  }
 0x1cf   : > { %v1675_v56 = vmax.f32 %v4787_v53, 0.0  ;;  %4714 = vmatprep.subr.bf16.mxu1 %v5138_v30  ;;  %v4373_v52 = vld [vmem:[%s7062_s7] ss:$0 sm:$0xff] }
 0x1d0   : > { %v1676_v58 = vmax.f32 %v4789_v54, 0.0 }
 0x1d1   : > { %v1683_v59 = vpack.c.bf16 %v1675_v56, %v1673_v55 }
 0x1d2   : > { %v1684_v60 = vpack.c.bf16 %v1676_v58, %v1674_v57  ;;  %4715 = vmatpush3.bf16.msra.mxu1 %v5138_v30 }
 0x1d3   : > { %4716 = vmatprep.subr.bf16.mxu1 %v5139_v31 }
 0x1d4   : > { %1876 = vmatprep.mubr.bf16.mxu1 %v1684_v60 }
 0x1d5   : > { %1877 = vmatmul.mubr.bf16.gmra.mrb[28].mxu1 %v1683_v59 }
 0x1d6   : > { %4717 = vmatpush3.bf16.msra.mxu1 %v5139_v31 }
 0x1d7   : > { %4718 = vmatprep.subr.bf16.mxu1 %v5140_v32 }
 0x1da   : > { %4719 = vmatpush3.bf16.msra.mxu1 %v5140_v32 }
 0x1db   : > { %4720 = vmatprep.subr.bf16.mxu1 %v5141_v39 }
 0x1de   : > { %4721 = vmatpush3.bf16.msra.mxu1 %v5141_v39 }
 0x1df   : > { %4730 = vmatprep.subr.bf16.mxu1 %v5142_v27 }
 0x290   : > { %v4624_v40 = vpop.f32.mrb[16].mxu1 }
 0x291   : > { %v4625_v62 = vpop.f32.mrb[17].mxu1 }
 0x292   : > { %v4626_v63 = vadd.f32 %v4625_v62, %v4624_v40  ;;  %v4627_v0 = vpop.f32.mrb[18].mxu1 }
 0x293   : > { %v4628_v1 = vpop.f32.mrb[19].mxu1 }
 0x294   : > { %v1855_v2 = vadd.f32 %v4626_v63, %v4356_v61  ;;  %v4629_v3 = vadd.f32 %v4628_v1, %v4627_v0  ;;  %v5143_v63 = vld [vmem:[%s7063_s8 + $0x8] sm:$0xff]  }
 0x296   : > { %v1858_v4 = vadd.f32 %v4629_v3, %v4356_v61  ;;  %v1885_v5 = vmax.f32 %v1855_v2, 0.0 }
 0x298   : > { %v1886_v6 = vmax.f32 %v1858_v4, 0.0  ;;  %v4630_v7 = vpop.f32.mrb[20].mxu1 }
 0x299   : > { %v4631_v8 = vpop.f32.mrb[21].mxu1 }
 0x29a   : > { %v4632_v9 = vadd.f32 %v4631_v8, %v4630_v7  ;;  %v4633_v10 = vpop.f32.mrb[22].mxu1  ;;  %v1893_v11 = vpack.c.bf16 %v1886_v6, %v1885_v5 }
 0x29b   : > { %v4634_v12 = vpop.f32.mrb[23].mxu1 }
 0x29c   : > { %v1863_v13 = vadd.f32 %v4632_v9, %v4356_v61  ;;  %v4635_v14 = vadd.f32 %v4634_v12, %v4633_v10  ;;  %4722 = vmatprep.mubr.bf16.mxu1 %v1893_v11 }
 0x29e   : > { %v1866_v15 = vadd.f32 %v4635_v14, %v4356_v61  ;;  %v1887_v16 = vmax.f32 %v1863_v13, 0.0 }
 0x2a0   : > { %v1888_v17 = vmax.f32 %v1866_v15, 0.0  ;;  %v4636_v18 = vpop.f32.mrb[24].mxu1 }
 0x2a1   : > { %v4637_v19 = vpop.f32.mrb[25].mxu1 }
 0x2a2   : > { %v1894_v20 = vpack.c.bf16 %v1888_v17, %v1887_v16  ;;  %v4638_v21 = vadd.f32 %v4637_v19, %v4636_v18  ;;  %v4639_v22 = vpop.f32.mrb[26].mxu1 }
 0x2a3   : > { %v4640_v23 = vpop.f32.mrb[27].mxu1 }
 0x2a4   : > { %v1871_v28 = vadd.f32 %v4638_v21, %v4356_v61  ;;  %v4641_v33 = vadd.f32 %v4640_v23, %v4639_v22  ;;  %4723 = vmatmul.mubr.bf16.vlgmr.msra.gmra.mrb[32].mxu1 %v1894_v20  ;;  %v5146_v21 = vld [vmem:[%s7065_s10 + $0x4] ss:$8 sps:$4 sm:$0xff]  }
 0x2a5   : > { %4731 = vmatpush3.bf16.msra.mxu1 %v5142_v27 }
 0x2a6   : > { %v1874_v36 = vadd.f32 %v4641_v33, %v4356_v61  ;;  %v1889_v41 = vmax.f32 %v1871_v28, 0.0  ;;  %4732 = vmatprep.subr.bf16.mxu1 %v5143_v63 }
 0x2a8   : > { %v1890_v42 = vmax.f32 %v1874_v36, 0.0  ;;  %v4642_v43 = vpop.f32.mrb[28].mxu1  ;;  %v2057_v36 = vld [vmem:[%s6262_s15] sm:$0xff] }
 0x2a9   : > { %v4643_v44 = vpop.f32.mrb[29].mxu1  ;;  %4733 = vmatpush3.bf16.msra.mxu1 %v5143_v63 }
 0x2aa   : > { %v4644_v45 = vadd.f32 %v4643_v44, %v4642_v43  ;;  %v4645_v46 = vpop.f32.mrb[30].mxu1  ;;  %v1895_v24 = vpack.c.bf16 %v1890_v42, %v1889_v41  ;;  %2338 = vmatprep.subr.bf16.mxu1 %v5146_v21  ;;  %v2059_v42 = vld [vmem:[%s6262_s15 + $0x10] sm:$0xff]  ;;  %v2060_v43 = vld [vmem:[%s6262_s15 + $0x18] sm:$0xff]  ;;  %v2058_v44 = vld [vmem:[%s6262_s15 + $0x8] sm:$0xff] }
 0x2ab   : > { %v4646_v47 = vpop.f32.mrb[31].mxu1  ;;  %v5185_v21 = vld [vmem:[%s7067_s12 + $0x84] ss:$28 sps:$4 sm:$0xff]  }
 0x2ac   : > { %v1879_v48 = vadd.f32 %v4644_v45, %v4356_v61  ;;  %v4647_v49 = vadd.f32 %v4646_v47, %v4645_v46  ;;  %4726 = vmatprep.mubr.bf16.mxu1 %v1895_v24 }
 0x2ae   : > { %v1882_v25 = vadd.f32 %v4647_v49, %v4356_v61  ;;  %v1891_v50 = vmax.f32 %v1879_v48, 0.0 }
 0x2b0   : > { %v1892_v26 = vmax.f32 %v1882_v25, 0.0 }
 0x2b2   : > { %v1896_v51 = vpack.c.bf16 %v1892_v26, %v1891_v50 }
 0x2b4   : > { %4727 = vmatmul.mubr.bf16.gmra.mrb[36].mxu1 %v1896_v51 }
 0x377   : > { %v4724_v53 = vpop.f32.mrb[32].mxu1 }
 0x378   : > { %v6202_v54 = vadd.f32 %v4724_v53, %v4373_v52  ;;  %v2002_v55 = vpop.f32.mrb[33].mxu1 }
 0x379   : > { %v6204_v56 = vadd.f32 %v4373_v52, %v2002_v55  ;;  %v4725_v57 = vpop.f32.mrb[34].mxu1  ;;  %v5149_v55 = vld [vmem:[%s7065_s10 + $0x14] ss:$8 sps:$4 sm:$0xff]  }
 0x37a   : > { %v2035_v58 = vmul.f32 0.5, %v6202_v54  ;;  %3895 = vst [vmem:[%s6207_s21 + $0x10] sm:$0xff] %v6202_v54  ;;  %v6211_v59 = vadd.f32 %v4725_v57, %v4373_v52  ;;  %v2005_v60 = vpop.f32.mrb[35].mxu1  ;;  %v5152_v57 = vld [vmem:[%s7065_s10 + $0x24] ss:$8 sps:$4 sm:$0xff]  }
 0x37b   : > { %v2033_v29 = vmul.f32 0.5, %v6204_v56  ;;  %3893 = vst [vmem:[%s6207_s21] sm:$0xff] %v6204_v56  ;;  %v6216_v30 = vadd.f32 %v4373_v52, %v2005_v60 }
 0x37c   : > { %v2045_v31 = vmul.f32 1.442695, %v2035_v58  ;;  %v2036_v32 = vmul.f32 0.5, %v6211_v59  ;;  %3896 = vst [vmem:[%s6207_s21 + $0x18] sm:$0xff] %v6211_v59 }
 0x37d   : > { %v2041_v39 = vmul.f32 1.442695, %v2033_v29  ;;  %v2034_v40 = vmul.f32 0.5, %v6216_v30  ;;  %3894 = vst [vmem:[%s6207_s21 + $0x8] sm:$0xff] %v6216_v30  ;;  %v5150_v29 = vld [vmem:[%s7065_s10 + $0x20] ss:$8 sps:$4 sm:$0xff]  }
 0x37e   : > { %5328 = vpow2.f32 %v2045_v31  ;;  %v2047_v61 = vmul.f32 1.442695, %v2036_v32  ;;  %v2063_v31 = vld [vmem:[%s6262_s15 + $0x30] sm:$0xff] }
 0x37f   : > { %5330 = vpow2.f32 %v2041_v39  ;;  %v2043_v62 = vmul.f32 1.442695, %v2034_v40  ;;  %v5155_v32 = vld [vmem:[%s7065_s10 + $0x34] ss:$8 sps:$4 sm:$0xff]  }
 0x380   : > { %5332 = vpow2.f32 %v2047_v61  ;;  %v2064_v61 = vld [vmem:[%s6262_s15 + $0x38] sm:$0xff] }
 0x381   : > { %5334 = vpow2.f32 %v2043_v62 }
 0x387   : > { %v4728_v0 = vpop.f32.mrb[36].mxu1 }
 0x388   : > { %v5329_v1 = vpop.eup %5328  ;;  %v6227_v2 = vadd.f32 %v4728_v0, %v4373_v52  ;;  %v2018_v3 = vpop.f32.mrb[37].mxu1 }
 0x389   : > { %v5331_v4 = vpop.eup %5330  ;;  %v6229_v5 = vadd.f32 %v4373_v52, %v2018_v3  ;;  %2077 = vrot.lane.b32.xlu1 %v5329_v1, %s5585_s29  ;;  %v4729_v6 = vpop.f32.mrb[38].mxu1  ;;  %v5153_v1 = vld [vmem:[%s7065_s10 + $0x30] ss:$8 sps:$4 sm:$0xff]  }
 0x38a   : > { %3899 = vst [vmem:[%s6207_s21 + $0x30] sm:$0xff] %v6227_v2  ;;  %v6234_v7 = vadd.f32 %v4729_v6, %v4373_v52  ;;  %2073 = vrot.lane.b32.xlu0 %v5331_v4, %s5585_s29  ;;  %v2021_v8 = vpop.f32.mrb[39].mxu1  ;;  %v2039_v9 = vmul.f32 0.5, %v6227_v2  ;;  %v5333_v12 = vpop.eup %5332  ;;  %v5158_v4 = vld [vmem:[%s7065_s10 + $0x44] ss:$8 sps:$4 sm:$0xff]  }
 0x38b   : > { %v2037_v10 = vmul.f32 0.5, %v6229_v5  ;;  %3897 = vst [vmem:[%s6207_s21 + $0x20] sm:$0xff] %v6229_v5  ;;  %v6241_v11 = vadd.f32 %v4373_v52, %v2021_v8  ;;  %v5335_v13 = vpop.eup %5334  ;;  %v5144_v52 = vld [vmem:[%s7065_s10] ss:$8 sps:$4 sm:$0xff]  }
 0x38c   : > { %3900 = vst [vmem:[%s6207_s21 + $0x38] sm:$0xff] %v6234_v7  ;;  %v2040_v15 = vmul.f32 0.5, %v6234_v7  ;;  %v2053_v17 = vmul.f32 1.442695, %v2039_v9 }
 0x38d   : > { %v2049_v14 = vmul.f32 1.442695, %v2037_v10  ;;  %v2038_v16 = vmul.f32 0.5, %v6241_v11  ;;  %3898 = vst [vmem:[%s6207_s21 + $0x28] sm:$0xff] %v6241_v11  ;;  %2079 = vrot.lane.b32.xlu1 %v5333_v12, %s5585_s29  ;;  %v5156_v10 = vld [vmem:[%s7065_s10 + $0x40] ss:$8 sps:$4 sm:$0xff]  }
 0x38e   : > { %2075 = vrot.lane.b32.xlu0 %v5335_v13, %s5585_s29  ;;  %v2055_v19 = vmul.f32 1.442695, %v2040_v15  ;;  %v5161_v12 = vld [vmem:[%s7065_s10 + $0x54] ss:$8 sps:$4 sm:$0xff]   ;;  %v5162_v13 = vld [vmem:[%s7065_s10 + $0x60] ss:$8 sps:$4 sm:$0xff]  }
 0x38f   : > { %5336 = vpow2.f32 %v2049_v14  ;;  %v2051_v18 = vmul.f32 1.442695, %v2038_v16  ;;  %v5167_v14 = vld [vmem:[%s7065_s10 + $0x74] ss:$8 sps:$4 sm:$0xff]   ;;  %v5165_v15 = vld [vmem:[%s7065_s10 + $0x70] ss:$8 sps:$4 sm:$0xff]  }
 0x390   : > { %v5170_v16 = vld [vmem:[%s7067_s12 + $0x4] ss:$28 sps:$4 sm:$0xff]  }
 0x391   : > { %5338 = vpow2.f32 %v2051_v18  ;;  %v5173_v18 = vld [vmem:[%s7067_s12 + $0x14] ss:$28 sps:$4 sm:$0xff]  }
 0x392   : > { %5340 = vpow2.f32 %v2053_v17  ;;  %v5171_v17 = vld [vmem:[%s7067_s12 + $0x10] ss:$28 sps:$4 sm:$0xff]   ;;  %3322 = vmatprep.subr.bf16.mxu0 %v5173_v18 }
 0x393   : > { %5342 = vpow2.f32 %v2055_v19  ;;  %v5179_v19 = vld [vmem:[%s7067_s12 + $0x4c] ss:$28 sps:$4 sm:$0xff]   ;;  %3323 = vmatpush1.bf16.msra.mxu0 %v5171_v17 }
 0x394   : > { %3324 = vmatprep.subr.bf16.mxu0 %v5179_v19 }
 0x399   : > { %v5337_v20 = vpop.eup %5336 }
 0x39a   : > { %2081 = vrot.lane.b32.xlu0 %v5337_v20, %s5585_s29  ;;  %v5177_v20 = vld [vmem:[%s7067_s12 + $0x48] ss:$28 sps:$4 sm:$0xff]  }
 0x39b   : > { %v5339_v22 = vpop.eup %5338  ;;  %3325 = vmatpush1.bf16.msra.mxu0 %v5177_v20 }
 0x39c   : > { %2083 = vrot.lane.b32.xlu1 %v5339_v22, %s5585_s29  ;;  %v5341_v23 = vpop.eup %5340  ;;  %v5183_v22 = vld [vmem:[%s7067_s12 + $0x80] ss:$28 sps:$4 sm:$0xff]   ;;  %3326 = vmatprep.subr.bf16.mxu0 %v5185_v21 }
 0x39d   : > { %v5343_v28 = vpop.eup %5342  ;;  %v5192_v21 = vld [vmem:[%s7067_s12 + $0xe0] ss:$28 sps:$4 sm:$0xff]  }
 0x39e   : > { %2085 = vrot.lane.b32.xlu0 %v5341_v23, %s5585_s29  ;;  %v5191_v23 = vld [vmem:[%s7067_s12 + $0xbc] ss:$28 sps:$4 sm:$0xff]  }
 0x39f   : > { %3327 = vmatpush1.bf16.msra.mxu0 %v5183_v22 }
 0x3a0   : > { %2087 = vrot.lane.b32.xlu1 %v5343_v28, %s5585_s29  ;;  %v5189_v28 = vld [vmem:[%s7067_s12 + $0xb8] ss:$28 sps:$4 sm:$0xff]   ;;  %3328 = vmatprep.subr.bf16.mxu0 %v5191_v23  ;;  %s7077_s29 = scalar_lea.sflag [#allocation3], %s6193_s16 }
 0x3a1   : > { %v5200_v23 = vld [vmem:[%s7067_s12 + $0x11c] ss:$28 sps:$4 sm:$0xff]  }
 0x3a3   : > { %3329 = vmatpush1.bf16.msra.mxu0 %v5189_v28  ;;  %v5198_v28 = vld [vmem:[%s7067_s12 + $0x118] ss:$28 sps:$4 sm:$0xff]  }
 0x3fb   : > { %v2078_v33 = vpop.permute.xlu1 %2077 }
 0x3fc   : > { %v2074_v41 = vpop.permute.xlu0 %2073  ;;  %v2099_v24 = vmul.f32 %v2078_v33, %v2059_v42  ;;  %v5197_v33 = vld [vmem:[%s7067_s12 + $0xf4] ss:$28 sps:$4 sm:$0xff]   ;;  %v5201_v42 = vld [vmem:[%s7067_s12 + $0x128] ss:$28 sps:$4 sm:$0xff]  }
 0x3fd   : > { %v2097_v45 = vmul.f32 %v2074_v41, %v2057_v36  ;;  %v5195_v36 = vld [vmem:[%s7067_s12 + $0xf0] ss:$28 sps:$4 sm:$0xff]   ;;  %3330 = vmatprep.subr.bf16.mxu0 %v5197_v33 }
 0x3fe   : > { %v2107_v51 = vadd.f32 %v2099_v24, %v6202_v54  ;;  %v5147_v54 = vld [vmem:[%s7065_s10 + $0x10] ss:$8 sps:$4 sm:$0xff]   ;;  %v5203_v41 = vld [vmem:[%s7067_s12 + $0x12c] ss:$28 sps:$4 sm:$0xff]   ;;  %3331 = vmatpush1.bf16.msra.mxu0 %v5195_v36 }
 0x3ff   : > { %v2080_v46 = vpop.permute.xlu1 %2079  ;;  %v2105_v50 = vadd.f32 %v2097_v45, %v6204_v56  ;;  %v2061_v56 = vld [vmem:[%s6262_s15 + $0x20] sm:$0xff]  ;;  %3332 = vmatprep.subr.bf16.mxu0 %v5203_v41  ;;  %v5215_v45 = vld [vmem:[%s7067_s12 + $0x19c] ss:$28 sps:$4 sm:$0xff]   ;;  %v5221_v24 = vld [vmem:[%s7067_s12 + $0x1d4] ss:$28 sps:$4 sm:$0xff]  }
 0x400   : > { %v2100_v47 = vmul.f32 %v2080_v46, %v2060_v43  ;;  %v2076_v48 = vpop.permute.xlu0 %2075  ;;  %v5209_v43 = vld [vmem:[%s7067_s12 + $0x164] ss:$28 sps:$4 sm:$0xff]   ;;  %v5213_v46 = vld [vmem:[%s7067_s12 + $0x198] ss:$28 sps:$4 sm:$0xff]   ;;  %v5204_v36 = vld [vmem:[%s7067_s12 + $0x150] ss:$28 sps:$4 sm:$0xff]  }
 0x401   : > { %v2098_v49 = vmul.f32 %v2076_v48, %v2058_v44  ;;  %v5207_v44 = vld [vmem:[%s7067_s12 + $0x160] ss:$28 sps:$4 sm:$0xff]   ;;  %v5227_v48 = vld [vmem:[%s7067_s12 + $0x20c] ss:$28 sps:$4 sm:$0xff]   ;;  %v5206_v33 = vld [vmem:[%s7067_s12 + $0x154] ss:$28 sps:$4 sm:$0xff]  }
 0x402   : > { %v2108_v25 = vadd.f32 %v2100_v47, %v6211_v59  ;;  %v2062_v59 = vld [vmem:[%s6262_s15 + $0x28] sm:$0xff]  ;;  %3333 = vmatpush1.bf16.msra.mxu0 %v5201_v42  ;;  %v5218_v42 = vld [vmem:[%s7067_s12 + $0x1c4] ss:$28 sps:$4 sm:$0xff]  }
 0x403   : > { %v2106_v26 = vadd.f32 %v2098_v49, %v6216_v30  ;;  %3334 = vmatprep.subr.bf16.mxu0 %v5209_v43  ;;  %v5219_v47 = vld [vmem:[%s7067_s12 + $0x1d0] ss:$28 sps:$4 sm:$0xff]   ;;  %v5225_v49 = vld [vmem:[%s7067_s12 + $0x208] ss:$28 sps:$4 sm:$0xff]   ;;  %v5216_v43 = vld [vmem:[%s7067_s12 + $0x1c0] ss:$28 sps:$4 sm:$0xff]  }
 0x404   : > { %v2114_v53 = vpack.c.bf16 %v2108_v25, %v2107_v51  ;;  %v5233_v25 = vld [vmem:[%s7067_s12 + $0x244] ss:$28 sps:$4 sm:$0xff]   ;;  %v5237_v51 = vld [vmem:[%s7067_s12 + $0x278] ss:$28 sps:$4 sm:$0xff]  }
 0x405   : > { %v2113_v27 = vpack.c.bf16 %v2106_v26, %v2105_v50  ;;  %v5231_v50 = vld [vmem:[%s7067_s12 + $0x240] ss:$28 sps:$4 sm:$0xff]   ;;  %v5210_v41 = vld [vmem:[%s7067_s12 + $0x188] ss:$28 sps:$4 sm:$0xff]  }
 0x406   : > { %3335 = vmatpush1.bf16.msra.mxu0 %v5207_v44  ;;  %v5239_v26 = vld [vmem:[%s7067_s12 + $0x27c] ss:$28 sps:$4 sm:$0xff]  }
 0x407   : > { %4734 = vmatprep.mubr.msk.bf16.mxu1 %vm2140_vm1, %v2113_v27  ;;  %3336 = vmatprep.subr.bf16.mxu0 %v5215_v45  ;;  %v5245_v27 = vld [vmem:[%s7067_s12 + $0x2b4] ss:$28 sps:$4 sm:$0xff]   ;;  %v5224_v44 = vld [vmem:[%s7067_s12 + $0x1fc] ss:$28 sps:$4 sm:$0xff]  }
 0x408   : > { %4735 = vmatmul.mubr.msk.bf16.vlgmr.msra.gmra.mrb[40].mxu1 %vm2140_vm1, %v2114_v53  ;;  %v5251_v53 = vld [vmem:[%s7067_s12 + $0x2ec] ss:$28 sps:$4 sm:$0xff]   ;;  %v5222_v45 = vld [vmem:[%s7067_s12 + $0x1f8] ss:$28 sps:$4 sm:$0xff]  }
 0x409   : > { %2339 = vmatpush1.bf16.msra.mxu1 %v5144_v52  ;;  %v5243_v52 = vld [vmem:[%s7067_s12 + $0x2b0] ss:$28 sps:$4 sm:$0xff]  }
 0x40a   : > { %2340 = vmatprep.subr.bf16.mxu1 %v5149_v55  ;;  %3337 = vmatpush1.bf16.msra.mxu0 %v5213_v46  ;;  %v5249_v55 = vld [vmem:[%s7067_s12 + $0x2e8] ss:$28 sps:$4 sm:$0xff]   ;;  %v5230_v46 = vld [vmem:[%s7067_s12 + $0x234] ss:$28 sps:$4 sm:$0xff]  }
 0x40b   : > { %3338 = vmatprep.subr.bf16.mxu0 %v5221_v24  ;;  %v5228_v24 = vld [vmem:[%s7067_s12 + $0x230] ss:$28 sps:$4 sm:$0xff]  }
 0x40c   : > { %v2082_v58 = vpop.permute.xlu0 %2081 }
 0x40d   : > { %v2101_v60 = vmul.f32 %v2082_v58, %v2061_v56  ;;  %2341 = vmatpush1.bf16.msra.mxu1 %v5147_v54  ;;  %v4382_v54 = vld [vmem:[%s7064_s9] ss:$0 sm:$0xff] }
 0x40e   : > { %v2084_v30 = vpop.permute.xlu1 %2083  ;;  %2342 = vmatprep.subr.bf16.mxu1 %v5152_v57  ;;  %3339 = vmatpush1.bf16.msra.mxu0 %v5219_v47  ;;  %v5236_v47 = vld [vmem:[%s7067_s12 + $0x26c] ss:$28 sps:$4 sm:$0xff]  }
 0x40f   : > { %v2102_v39 = vmul.f32 %v2084_v30, %v2062_v59  ;;  %v2109_v62 = vadd.f32 %v2101_v60, %v6229_v5  ;;  %3340 = vmatprep.subr.bf16.mxu0 %v5227_v48  ;;  %v5234_v48 = vld [vmem:[%s7067_s12 + $0x268] ss:$28 sps:$4 sm:$0xff]  }
 0x410   : > { %v2086_v40 = vpop.permute.xlu0 %2085 }
 0x411   : > { %v2110_v63 = vadd.f32 %v2102_v39, %v6241_v11  ;;  %v2103_v0 = vmul.f32 %v2086_v40, %v2063_v31  ;;  %2343 = vmatpush1.bf16.msra.mxu1 %v5150_v29 }
 0x412   : > { %v2088_v3 = vpop.permute.xlu1 %2087  ;;  %2344 = vmatprep.subr.bf16.mxu1 %v5155_v32  ;;  %3341 = vmatpush1.bf16.msra.mxu0 %v5225_v49  ;;  %v5242_v49 = vld [vmem:[%s7067_s12 + $0x2a4] ss:$28 sps:$4 sm:$0xff]  }
 0x413   : > { %v2115_v6 = vpack.c.bf16 %v2110_v63, %v2109_v62  ;;  %v2104_v8 = vmul.f32 %v2088_v3, %v2064_v61  ;;  %v2111_v9 = vadd.f32 %v2103_v0, %v6227_v2  ;;  %v5159_v2 = vld [vmem:[%s7065_s10 + $0x50] ss:$8 sps:$4 sm:$0xff]   ;;  %3342 = vmatprep.subr.bf16.mxu0 %v5233_v25  ;;  %v5168_v63 = vld [vmem:[%s7067_s12] ss:$28 sps:$4 sm:$0xff]  }
 0x414   : > { %v5174_v3 = vld [vmem:[%s7067_s12 + $0x38] ss:$28 sps:$4 sm:$0xff]   ;;  %v5240_v25 = vld [vmem:[%s7067_s12 + $0x2a0] ss:$28 sps:$4 sm:$0xff]  }
 0x415   : > { %v2112_v5 = vadd.f32 %v2104_v8, %v6234_v7  ;;  %4738 = vmatprep.mubr.msk.bf16.mxu1 %vm2140_vm1, %v2115_v6  ;;  %2345 = vmatpush1.bf16.msra.mxu1 %v5153_v1  ;;  %v5164_v7 = vld [vmem:[%s7065_s10 + $0x64] ss:$8 sps:$4 sm:$0xff]   ;;  %v5176_v1 = vld [vmem:[%s7067_s12 + $0x3c] ss:$28 sps:$4 sm:$0xff]  }
 0x416   : > { %2346 = vmatprep.subr.bf16.mxu1 %v5158_v4  ;;  %3343 = vmatpush1.bf16.msra.mxu0 %v5231_v50  ;;  %v5182_v4 = vld [vmem:[%s7067_s12 + $0x74] ss:$28 sps:$4 sm:$0xff]   ;;  %v5188_v8 = vld [vmem:[%s7067_s12 + $0xac] ss:$28 sps:$4 sm:$0xff]   ;;  %v5248_v50 = vld [vmem:[%s7067_s12 + $0x2dc] ss:$28 sps:$4 sm:$0xff]  }
 0x417   : > { %v2116_v11 = vpack.c.bf16 %v2112_v5, %v2111_v9  ;;  %3344 = vmatprep.subr.bf16.mxu0 %v5239_v26  ;;  %v5180_v6 = vld [vmem:[%s7067_s12 + $0x70] ss:$28 sps:$4 sm:$0xff]   ;;  %v5246_v26 = vld [vmem:[%s7067_s12 + $0x2d8] ss:$28 sps:$4 sm:$0xff]  }
 0x419   : > { %4739 = vmatmul.mubr.msk.bf16.gmra.mrb[44].mxu1 %vm2140_vm1, %v2116_v11 }
 0x41a   : > { %2347 = vmatpush1.bf16.msra.mxu1 %v5156_v10  ;;  %2370 = vmatprep.mubr.bf16.mxu1 %v5584_v38 }
 0x41b   : > { %2348 = vmatprep.subr.bf16.mxu1 %v5161_v12  ;;  %3345 = vmatpush1.bf16.msra.mxu0 %v5237_v51  ;;  %v5254_v51 = vld [vmem:[%s7067_s12 + $0x314] ss:$28 sps:$4 sm:$0xff]  }
 0x41c   : > { %3346 = vmatprep.subr.bf16.mxu0 %v5245_v27  ;;  %v5252_v27 = vld [vmem:[%s7067_s12 + $0x310] ss:$28 sps:$4 sm:$0xff]  }
 0x41e   : > { %2349 = vmatpush1.bf16.msra.mxu1 %v5159_v2  ;;  %v5186_v2 = vld [vmem:[%s7067_s12 + $0xa8] ss:$28 sps:$4 sm:$0xff]  }
 0x41f   : > { %2350 = vmatprep.subr.bf16.mxu1 %v5164_v7  ;;  %3347 = vmatpush1.bf16.msra.mxu0 %v5243_v52  ;;  %v5257_v52 = vld [vmem:[%s7067_s12 + $0x324] ss:$28 sps:$4 sm:$0xff]  }
 0x420   : > { %3348 = vmatprep.subr.bf16.mxu0 %v5251_v53  ;;  %v5255_v53 = vld [vmem:[%s7067_s12 + $0x320] ss:$28 sps:$4 sm:$0xff]  }
 0x422   : > { %2351 = vmatpush1.bf16.msra.mxu1 %v5162_v13 }
 0x423   : > { %2352 = vmatprep.subr.bf16.mxu1 %v5167_v14  ;;  %3349 = vmatpush1.bf16.msra.mxu0 %v5249_v55  ;;  %v5194_v14 = vld [vmem:[%s7067_s12 + $0xe4] ss:$28 sps:$4 sm:$0xff]   ;;  %v5260_v55 = vld [vmem:[%s7067_s12 + $0x34c] ss:$28 sps:$4 sm:$0xff]  }
 0x424   : > { %3350 = vmatprep.subr.bf16.mxu0 %v5257_v52  ;;  %v5286_v52 = vld [vmem:[%s7067_s12 + $0xec] ss:$28 sps:$4 sm:$0xff]  }
 0x426   : > { %2353 = vmatpush1.bf16.msra.mxu1 %v5165_v15 }
 0x427   : > { %3176 = vmatprep.subr.bf16.mxu1 %v5170_v16  ;;  %3351 = vmatpush1.bf16.msra.mxu0 %v5255_v53  ;;  %v6642_v53 = vld [vmem:[%s7067_s12 + $0x2b8] ss:$28 sps:$4 sm:$0xff]  }
 0x4db   : > { %v4736_v56 = vpop.f32.mrb[40].mxu1 }
 0x4dc   : > { %v2196_v57 = vadd.f32 %v4736_v56, %v4382_v54  ;;  %v2187_v58 = vpop.f32.mrb[41].mxu1  ;;  %v5263_v56 = vld [vmem:[%s7067_s12 + $0x35c] ss:$28 sps:$4 sm:$0xff]  }
 0x4dd   : > { %v2188_v59 = vadd.f32 %v4382_v54, %v2187_v58  ;;  %v4737_v60 = vpop.f32.mrb[42].mxu1  ;;  %3352 = vmatprep.subr.bf16.mxu0 %v5263_v56  ;;  %v5266_v58 = vld [vmem:[%s7067_s12 + $0xc] ss:$28 sps:$4 sm:$0xff]  }
 0x4de   : > { %v2199_v29 = vadd.f32 %v4737_v60, %v4382_v54  ;;  %v2190_v30 = vpop.f32.mrb[43].mxu1  ;;  %v2220_v32 = vmax.f32 %v2196_v57, 0.0  ;;  %v5261_v57 = vld [vmem:[%s7067_s12 + $0x358] ss:$28 sps:$4 sm:$0xff]   ;;  %v2246_v60 = vld [vmem:[%s7066_s11] sm:$0x3] }
 0x4df   : > { %v2191_v31 = vadd.f32 %v4382_v54, %v2190_v30  ;;  %v2218_v40 = vmax.f32 %v2188_v59, 0.0  ;;  %3353 = vmatpush1.bf16.msra.mxu0 %v5261_v57  ;;  %v6534_v59 = vld [vmem:[%s7067_s12 + $0x1d8] ss:$28 sps:$4 sm:$0xff]   ;;  %v6544_v30 = vrot.slane %v2246_v60, %v6136_v37 }
 0x4e0   : > { %v2221_v39 = vmax.f32 %v2199_v29, 0.0  ;;  %4666 = vmatprep.subr.bf16.mxu0 %v6534_v59  ;;  %v6541_v29 = vrot.slane %v2246_v60, %v6130_v35  ;;  %v5284_v60 = vld [vmem:[%s7067_s12 + $0xe8] ss:$28 sps:$4 sm:$0xff]  }
 0x4e1   : > { %v2219_v61 = vmax.f32 %v2191_v31, 0.0 }
 0x4e2   : > { %v2227_v62 = vpack.c.bf16 %v2221_v39, %v2220_v32 }
 0x4e3   : > { %v2226_v0 = vpack.c.bf16 %v2219_v61, %v2218_v40 }
 0x4e5   : > { %2371 = vmatmul.mubr.bf16.vlgmr.msra.gmra.mrb[48].mxu1 %v2226_v0 }
 0x4e6   : > { %2380 = vmatprep.mubr.bf16.mxu1 %v5584_v38  ;;  %3177 = vmatpush1.bf16.msra.mxu1 %v5168_v63 }
 0x4e7   : > { %3178 = vmatprep.subr.bf16.mxu1 %v5176_v1 }
 0x4ea   : > { %3179 = vmatpush1.bf16.msra.mxu1 %v5174_v3 }
 0x4eb   : > { %3180 = vmatprep.subr.bf16.mxu1 %v5182_v4 }
 0x4ec   : > { %v4740_v9 = vpop.f32.mrb[44].mxu1 }
 0x4ed   : > { %v2212_v5 = vadd.f32 %v4740_v9, %v4382_v54  ;;  %v2203_v10 = vpop.f32.mrb[45].mxu1  ;;  %2381 = vmatmul.mubr.bf16.gmra.mrb[52].mxu1 %v2227_v62 }
 0x4ee   : > { %v2204_v11 = vadd.f32 %v4382_v54, %v2203_v10  ;;  %v4741_v12 = vpop.f32.mrb[46].mxu1  ;;  %2390 = vmatprep.mubr.bf16.mxu1 %v5584_v38  ;;  %3181 = vmatpush1.bf16.msra.mxu1 %v5180_v6  ;;  %v5264_v10 = vld [vmem:[%s7067_s12 + $0x8] ss:$28 sps:$4 sm:$0xff]  }
 0x4ef   : > { %v2215_v7 = vadd.f32 %v4741_v12, %v4382_v54  ;;  %v2206_v13 = vpop.f32.mrb[47].mxu1  ;;  %3182 = vmatprep.subr.bf16.mxu1 %v5188_v8  ;;  %v2224_v16 = vmax.f32 %v2212_v5, 0.0 }
 0x4f0   : > { %v2207_v15 = vadd.f32 %v4382_v54, %v2206_v13  ;;  %v2222_v18 = vmax.f32 %v2204_v11, 0.0  ;;  %v5258_v54 = vld [vmem:[%s7067_s12 + $0x348] ss:$28 sps:$4 sm:$0xff]   ;;  %v6560_v11 = vld [vmem:[%s7067_s12 + $0x18] ss:$28 sps:$4 sm:$0xff]  }
 0x4f1   : > { %v2225_v17 = vmax.f32 %v2215_v7, 0.0  ;;  %v5271_v7 = vld [vmem:[%s7067_s12 + $0x44] ss:$28 sps:$4 sm:$0xff]   ;;  %v6569_v13 = vld [vmem:[%s7067_s12 + $0x210] ss:$28 sps:$4 sm:$0xff]  }
 0x4f2   : > { %v2223_v19 = vmax.f32 %v2207_v15, 0.0  ;;  %3183 = vmatpush1.bf16.msra.mxu1 %v5186_v2 }
 0x4f3   : > { %v2229_v20 = vpack.c.bf16 %v2225_v17, %v2224_v16  ;;  %3184 = vmatprep.subr.bf16.mxu1 %v5194_v14 }
 0x4f4   : > { %v2228_v22 = vpack.c.bf16 %v2223_v19, %v2222_v18  ;;  %v5269_v19 = vld [vmem:[%s7067_s12 + $0x40] ss:$28 sps:$4 sm:$0xff]  }
 0x4f6   : > { %2391 = vmatmul.mubr.bf16.gmra.mrb[56].mxu1 %v2228_v22 }
 0x4f7   : > { %2400 = vmatprep.mubr.bf16.mxu1 %v5584_v38  ;;  %3185 = vmatpush1.bf16.msra.mxu1 %v5192_v21  ;;  %v5212_v38 = vld [vmem:[%s7067_s12 + $0x18c] ss:$28 sps:$4 sm:$0xff]  }
 0x4f8   : > { %3186 = vmatprep.subr.bf16.mxu1 %v5200_v23  ;;  %v5276_v23 = vld [vmem:[%s7067_s12 + $0x7c] ss:$28 sps:$4 sm:$0xff]  }
 0x4fb   : > { %3187 = vmatpush1.bf16.msra.mxu1 %v5198_v28  ;;  %v6594_v28 = vld [vmem:[%s7067_s12 + $0x248] ss:$28 sps:$4 sm:$0xff]  }
 0x4fc   : > { %3188 = vmatprep.subr.bf16.mxu1 %v5206_v33 }
 0x4fe   : > { %2401 = vmatmul.mubr.bf16.gmra.mrb[60].mxu1 %v2229_v20  ;;  %v6585_v20 = vld [vmem:[%s7067_s12 + $0x50] ss:$28 sps:$4 sm:$0xff]  }
 0x4ff   : > { %3189 = vmatpush1.bf16.msra.mxu1 %v5204_v36 }
 0x500   : > { %3190 = vmatprep.subr.bf16.mxu1 %v5212_v38 }
 0x503   : > { %3191 = vmatpush1.bf16.msra.mxu1 %v5210_v41 }
 0x504   : > { %3192 = vmatprep.subr.bf16.mxu1 %v5218_v42  ;;  %v5274_v42 = vld [vmem:[%s7067_s12 + $0x78] ss:$28 sps:$4 sm:$0xff]  }
 0x507   : > { %3193 = vmatpush1.bf16.msra.mxu1 %v5216_v43  ;;  %v6607_v43 = vld [vmem:[%s7067_s12 + $0x88] ss:$28 sps:$4 sm:$0xff]  }
 0x508   : > { %3194 = vmatprep.subr.bf16.mxu1 %v5224_v44 }
 0x50b   : > { %3195 = vmatpush1.bf16.msra.mxu1 %v5222_v45  ;;  %v5281_v45 = vld [vmem:[%s7067_s12 + $0xb4] ss:$28 sps:$4 sm:$0xff]  }
 0x50c   : > { %3196 = vmatprep.subr.bf16.mxu1 %v5230_v46  ;;  %v6616_v46 = vld [vmem:[%s7067_s12 + $0x280] ss:$28 sps:$4 sm:$0xff]  }
 0x50f   : > { %3197 = vmatpush1.bf16.msra.mxu1 %v5228_v24 }
 0x510   : > { %3198 = vmatprep.subr.bf16.mxu1 %v5236_v47 }
 0x513   : > { %3199 = vmatpush1.bf16.msra.mxu1 %v5234_v48 }
 0x514   : > { %3200 = vmatprep.subr.bf16.mxu1 %v5242_v49 }
 0x517   : > { %3201 = vmatpush1.bf16.msra.mxu1 %v5240_v25 }
 0x518   : > { %3202 = vmatprep.subr.bf16.mxu1 %v5248_v50 }
 0x51b   : > { %3203 = vmatpush1.bf16.msra.mxu1 %v5246_v26  ;;  %v5279_v26 = vld [vmem:[%s7067_s12 + $0xb0] ss:$28 sps:$4 sm:$0xff]  }
 0x51c   : > { %3204 = vmatprep.subr.bf16.mxu1 %v5254_v51  ;;  %v6632_v51 = vld [vmem:[%s7067_s12 + $0xc0] ss:$28 sps:$4 sm:$0xff]  }
 0x51f   : > { %3205 = vmatpush1.bf16.msra.mxu1 %v5252_v27 }
 0x520   : > { %3206 = vmatprep.subr.bf16.mxu1 %v5260_v55 }
 0x523   : > { %3207 = vmatpush1.bf16.msra.mxu1 %v5258_v54 }
 0x524   : > { %3249 = vmatprep.subr.bf16.mxu1 %v5266_v58 }
 0x5b8   : > { %v2372_v31 = vpop.f32.mrb[48].mxu1 }
 0x5b9   : > { %v2373_v32 = vadd.f32 %v2372_v31, %v6541_v29  ;;  %v2374_v39 = vpop.f32.mrb[49].mxu1 }
 0x5ba   : > { %v2375_v40 = vadd.f32 %v2374_v39, %v6544_v30  ;;  %v2376_v61 = vpop.f32.mrb[50].mxu1  ;;  %v6656_v39 = vld [vmem:[%s7067_s12 + $0xf8] ss:$28 sps:$4 sm:$0xff]  }
 0x5bb   : > { %v2377_v62 = vadd.f32 %v2376_v61, %v6541_v29  ;;  %v2378_v63 = vpop.f32.mrb[51].mxu1  ;;  %v2411_v1 = vmax.f32 %v2373_v32, 0.0 }
 0x5bc   : > { %v2379_v0 = vadd.f32 %v2378_v63, %v6544_v30  ;;  %v2412_v4 = vmax.f32 %v2375_v40, 0.0  ;;  %v6665_v63 = vld [vmem:[%s7067_s12 + $0x2f0] ss:$28 sps:$4 sm:$0xff]  }
 0x5bd   : > { %v2413_v3 = vmax.f32 %v2377_v62, 0.0  ;;  %v5291_v62 = vld [vmem:[%s7067_s12 + $0x124] ss:$28 sps:$4 sm:$0xff]  }
 0x5be   : > { %v2414_v6 = vmax.f32 %v2379_v0, 0.0 }
 0x5bf   : > { %v6550_v8 = vpack.c.bf16 %v2413_v3, %v2411_v1 }
 0x5c0   : > { %v6552_v9 = vpack.c.bf16 %v2414_v6, %v2412_v4  ;;  %v2382_v5 = vpop.f32.mrb[52].mxu1  ;;  %v5289_v6 = vld [vmem:[%s7067_s12 + $0x120] ss:$28 sps:$4 sm:$0xff]  }
 0x5c1   : > { %v2383_v12 = vadd.f32 %v2382_v5, %v6541_v29  ;;  %v2384_v2 = vpop.f32.mrb[53].mxu1 }
 0x5c2   : > { %v2385_v14 = vadd.f32 %v2384_v2, %v6544_v30  ;;  %v2386_v15 = vpop.f32.mrb[54].mxu1  ;;  %3208 = vmatprep.mubr.bf16.mxu1 %v6552_v9  ;;  %3354 = vmatprep.mubr.bf16.mxu0 %v6552_v9 }
 0x5c3   : > { %v2387_v16 = vadd.f32 %v2386_v15, %v6541_v29  ;;  %v2388_v17 = vpop.f32.mrb[55].mxu1  ;;  %3209 = vmatmul.mubr.bf16.vlgmr.msra.gmra.mrb[64].mxu1 %v6550_v8  ;;  %3355 = vmatmul.mubr.bf16.vlgmr.msra.gmra.mrb[16].mxu0 %v6550_v8  ;;  %v2415_v21 = vmax.f32 %v2383_v12, 0.0 }
 0x5c4   : > { %v2389_v18 = vadd.f32 %v2388_v17, %v6544_v30  ;;  %3250 = vmatpush1.bf16.msra.mxu1 %v5264_v10  ;;  %4667 = vmatpush3.bf16.msra.mxu0 %v6560_v11  ;;  %v2416_v33 = vmax.f32 %v2385_v14, 0.0  ;;  %v6681_v10 = vld [vmem:[%s7067_s12 + $0x130] ss:$28 sps:$4 sm:$0xff]  }
 0x5c5   : > { %v2417_v22 = vmax.f32 %v2387_v16, 0.0  ;;  %3251 = vmatprep.subr.bf16.mxu1 %v5271_v7  ;;  %4668 = vmatprep.subr.bf16.mxu0 %v6569_v13  ;;  %v5294_v16 = vld [vmem:[%s7067_s12 + $0x158] ss:$28 sps:$4 sm:$0xff]  }
 0x5c6   : > { %v2418_v36 = vmax.f32 %v2389_v18, 0.0  ;;  %v6703_v18 = vld [vmem:[%s7067_s12 + $0x168] ss:$28 sps:$4 sm:$0xff]  }
 0x5c7   : > { %v6596_v38 = vpack.c.bf16 %v2417_v22, %v2415_v21  ;;  %v6714_v21 = vld [vmem:[%s7067_s12 + $0x360] ss:$28 sps:$4 sm:$0xff]   ;;  %v5299_v22 = vld [vmem:[%s7067_s12 + $0x190] ss:$28 sps:$4 sm:$0xff]  }
 0x5c8   : > { %v6598_v41 = vpack.c.bf16 %v2418_v36, %v2416_v33  ;;  %3252 = vmatpush1.bf16.msra.mxu1 %v5269_v19  ;;  %4669 = vmatpush3.bf16.msra.mxu0 %v6585_v20  ;;  %v5301_v19 = vld [vmem:[%s7067_s12 + $0x194] ss:$28 sps:$4 sm:$0xff]   ;;  %v5306_v33 = vld [vmem:[%s7067_s12 + $0x1cc] ss:$28 sps:$4 sm:$0xff]  }
 0x5c9   : > { %v2392_v44 = vpop.f32.mrb[56].mxu1  ;;  %3253 = vmatprep.subr.bf16.mxu1 %v5276_v23  ;;  %4670 = vmatprep.subr.bf16.mxu0 %v6594_v28  ;;  %v5303_v23 = vld [vmem:[%s7067_s12 + $0x1a0] ss:$28 sps:$4 sm:$0xff]   ;;  %v5304_v36 = vld [vmem:[%s7067_s12 + $0x1c8] ss:$28 sps:$4 sm:$0xff]  }
 0x5ca   : > { %v2393_v24 = vadd.f32 %v2392_v44, %v6541_v29  ;;  %v2394_v47 = vpop.f32.mrb[57].mxu1  ;;  %3218 = vmatprep.mubr.bf16.mxu1 %v6598_v41  ;;  %3364 = vmatprep.mubr.bf16.mxu0 %v6598_v41  ;;  %v5312_v44 = vld [vmem:[%s7067_s12 + $0x23c] ss:$28 sps:$4 sm:$0xff]  }
 0x5cb   : > { %v2395_v48 = vadd.f32 %v2394_v47, %v6544_v30  ;;  %v2396_v49 = vpop.f32.mrb[58].mxu1  ;;  %3219 = vmatmul.mubr.bf16.gmra.mrb[68].mxu1 %v6596_v38  ;;  %3365 = vmatmul.mubr.bf16.gmra.mrb[20].mxu0 %v6596_v38  ;;  %v5313_v47 = vld [vmem:[%s7067_s12 + $0x270] ss:$28 sps:$4 sm:$0xff]  }
 0x5cc   : > { %v2397_v25 = vadd.f32 %v2396_v49, %v6541_v29  ;;  %3254 = vmatpush1.bf16.msra.mxu1 %v5274_v42  ;;  %v2398_v50 = vpop.f32.mrb[59].mxu1  ;;  %4671 = vmatpush3.bf16.msra.mxu0 %v6607_v43  ;;  %v2419_v55 = vmax.f32 %v2393_v24, 0.0  ;;  %v5309_v42 = vld [vmem:[%s7067_s12 + $0x204] ss:$28 sps:$4 sm:$0xff]   ;;  %v5315_v24 = vld [vmem:[%s7067_s12 + $0x274] ss:$28 sps:$4 sm:$0xff]  }
 0x5cd   : > { %v2399_v27 = vadd.f32 %v2398_v50, %v6544_v30  ;;  %3255 = vmatprep.subr.bf16.mxu1 %v5281_v45  ;;  %4672 = vmatprep.subr.bf16.mxu0 %v6616_v46  ;;  %v2420_v56 = vmax.f32 %v2395_v48, 0.0  ;;  %v5310_v45 = vld [vmem:[%s7067_s12 + $0x238] ss:$28 sps:$4 sm:$0xff]   ;;  %v5318_v48 = vld [vmem:[%s7067_s12 + $0x2ac] ss:$28 sps:$4 sm:$0xff]  }
 0x5ce   : > { %v2421_v54 = vmax.f32 %v2397_v25, 0.0  ;;  %v5316_v49 = vld [vmem:[%s7067_s12 + $0x2a8] ss:$28 sps:$4 sm:$0xff]   ;;  %v5319_v50 = vld [vmem:[%s7067_s12 + $0x2e0] ss:$28 sps:$4 sm:$0xff]  }
 0x5cf   : > { %v2422_v57 = vmax.f32 %v2399_v27, 0.0  ;;  %v5321_v25 = vld [vmem:[%s7067_s12 + $0x2e4] ss:$28 sps:$4 sm:$0xff]   ;;  %v5322_v27 = vld [vmem:[%s7067_s12 + $0x318] ss:$28 sps:$4 sm:$0xff]  }
 0x5d0   : > { %v6644_v58 = vpack.c.bf16 %v2421_v54, %v2419_v55  ;;  %3256 = vmatpush1.bf16.msra.mxu1 %v5279_v26  ;;  %4673 = vmatpush3.bf16.msra.mxu0 %v6632_v51  ;;  %v5324_v26 = vld [vmem:[%s7067_s12 + $0x31c] ss:$28 sps:$4 sm:$0xff]   ;;  %v5325_v55 = vld [vmem:[%s7067_s12 + $0x350] ss:$28 sps:$4 sm:$0xff]  }
 0x5d1   : > { %v6650_v31 = vpack.c.bf16 %v2422_v57, %v2420_v56  ;;  %v2402_v32 = vpop.f32.mrb[60].mxu1  ;;  %3257 = vmatprep.subr.bf16.mxu1 %v5286_v52  ;;  %4674 = vmatprep.subr.bf16.mxu0 %v6642_v53  ;;  %v5327_v52 = vld [vmem:[%s7067_s12 + $0x354] ss:$28 sps:$4 sm:$0xff]  }
 0x5d2   : > { %v2403_v40 = vadd.f32 %v2402_v32, %v6541_v29  ;;  %v2404_v61 = vpop.f32.mrb[61].mxu1 }
 0x5d3   : > { %v2405_v0 = vadd.f32 %v2404_v61, %v6544_v30  ;;  %v2406_v1 = vpop.f32.mrb[62].mxu1  ;;  %3228 = vmatprep.mubr.bf16.mxu1 %v6650_v31  ;;  %3374 = vmatprep.mubr.bf16.mxu0 %v6650_v31 }
 0x5d4   : > { %v2407_v3 = vadd.f32 %v2406_v1, %v6541_v29  ;;  %3258 = vmatpush1.bf16.msra.mxu1 %v5284_v60  ;;  %v2408_v4 = vpop.f32.mrb[63].mxu1  ;;  %3375 = vmatmul.mubr.bf16.gmra.mrb[24].mxu0 %v6644_v58  ;;  %v5296_v29 = vld [vmem:[%s7067_s12 + $0x15c] ss:$28 sps:$4 sm:$0xff]   ;;  %v2423_v12 = vmax.f32 %v2403_v40, 0.0 }
 0x5d5   : > { %v2409_v5 = vadd.f32 %v2408_v4, %v6544_v30  ;;  %3229 = vmatmul.mubr.bf16.gmra.mrb[72].mxu1 %v6644_v58  ;;  %4675 = vmatpush3.bf16.msra.mxu0 %v6656_v39  ;;  %v6690_v30 = vld [vmem:[%s7067_s12 + $0x328] ss:$28 sps:$4 sm:$0xff]   ;;  %v2424_v7 = vmax.f32 %v2405_v0, 0.0 }
 0x5d6   : > { %v2425_v2 = vmax.f32 %v2407_v3, 0.0  ;;  %3259 = vmatprep.subr.bf16.mxu1 %v5291_v62  ;;  %4676 = vmatprep.subr.bf16.mxu0 %v6665_v63 }
 0x5d7   : > { %v2426_v14 = vmax.f32 %v2409_v5, 0.0 }
 0x5d8   : > { %v6692_v15 = vpack.c.bf16 %v2425_v2, %v2423_v12  ;;  %3260 = vmatpush1.bf16.msra.mxu1 %v5289_v6 }
 0x5d9   : > { %v6697_v17 = vpack.c.bf16 %v2426_v14, %v2424_v7  ;;  %4677 = vmatpush3.bf16.msra.mxu0 %v6681_v10  ;;  %3261 = vmatprep.subr.bf16.mxu1 %v5296_v29 }
 0x5da   : > { %4678 = vmatprep.subr.bf16.mxu0 %v6690_v30 }
 0x5db   : > { %3238 = vmatprep.mubr.bf16.mxu1 %v6697_v17  ;;  %3384 = vmatprep.mubr.bf16.mxu0 %v6697_v17 }
 0x5dc   : > { %3262 = vmatpush1.bf16.msra.mxu1 %v5294_v16  ;;  %3385 = vmatmul.mubr.bf16.gmra.mrb[28].mxu0 %v6692_v15 }
 0x5dd   : > { %3239 = vmatmul.mubr.bf16.gmra.mrb[76].mxu1 %v6692_v15  ;;  %4679 = vmatpush3.bf16.msra.mxu0 %v6703_v18 }
 0x5de   : > { %3281 = vmatprep.mubr.bf16.mxu1 %v6552_v9  ;;  %3427 = vmatprep.mubr.bf16.mxu0 %v6552_v9  ;;  %v5307_v9 = vld [vmem:[%s7067_s12 + $0x200] ss:$28 sps:$4 sm:$0xff]  }
 0x5df   : > { %3263 = vmatprep.subr.bf16.mxu1 %v5301_v19  ;;  %4680 = vmatprep.subr.bf16.mxu0 %v6714_v21 }
 0x5e0   : > { %3264 = vmatpush1.bf16.msra.mxu1 %v5299_v22 }
 0x5e1   : > { %4681 = vmatpush3.bf16.msra.mxu0 %v5303_v23  ;;  %3265 = vmatprep.subr.bf16.mxu1 %v5306_v33 }
 0x5e4   : > { %3266 = vmatpush1.bf16.msra.mxu1 %v5304_v36  ;;  %3428 = vmatmul.mubr.bf16.vlgmr.msra.gmra.mrb[32].mxu0 %v6550_v8 }
 0x5e5   : > { %3267 = vmatprep.subr.bf16.mxu1 %v5309_v42 }
 0x5e8   : > { %3268 = vmatpush1.bf16.msra.mxu1 %v5307_v9 }
 0x5e9   : > { %3269 = vmatprep.subr.bf16.mxu1 %v5312_v44 }
 0x5ec   : > { %3270 = vmatpush1.bf16.msra.mxu1 %v5310_v45 }
 0x5ed   : > { %3271 = vmatprep.subr.bf16.mxu1 %v5315_v24 }
 0x5f0   : > { %3272 = vmatpush1.bf16.msra.mxu1 %v5313_v47 }
 0x5f1   : > { %3273 = vmatprep.subr.bf16.mxu1 %v5318_v48 }
 0x5f4   : > { %3274 = vmatpush1.bf16.msra.mxu1 %v5316_v49 }
 0x5f5   : > { %3275 = vmatprep.subr.bf16.mxu1 %v5321_v25 }
 0x5f8   : > { %3276 = vmatpush1.bf16.msra.mxu1 %v5319_v50 }
 0x5f9   : > { %3277 = vmatprep.subr.bf16.mxu1 %v5324_v26 }
 0x5fc   : > { %3278 = vmatpush1.bf16.msra.mxu1 %v5322_v27 }
 0x5fd   : > { %3279 = vmatprep.subr.bf16.mxu1 %v5327_v52 }
 0x600   : > { %3280 = vmatpush1.bf16.msra.mxu1 %v5325_v55 }
 0x601   : > { %4742 = vmatprep.subr.bf16.mxu1 %v6534_v59  ;;  %v2583_v59 = vsub.s32 4, %v6127_v34 }
 0x603   : > { %3282 = vmatmul.mubr.bf16.vlgmr.msra.gmra.mrb[80].mxu1 %v6550_v8  ;;  %v6809_v8 = vld [vmem:[%s7068_s13] sm:$0x7f] }
 0x604   : > { %3291 = vmatprep.mubr.bf16.mxu1 %v6598_v41  ;;  %4750 = vmatpush3.bf16.msra.mxu1 %v6560_v11  ;;  %v2587_v11 = vsub.s32 5, %v6127_v34 }
 0x605   : > { %4743 = vmatprep.subr.bf16.mxu1 %v6569_v13  ;;  %v6814_v13 = vrot.slane %v6809_v8, %v6130_v35 }
 0x608   : > { %4751 = vmatpush3.bf16.msra.mxu1 %v6585_v20  ;;  %v6817_v20 = vrot.slane %v6809_v8, %v2583_v59 }
 0x609   : > { %4744 = vmatprep.subr.bf16.mxu1 %v6594_v28  ;;  %v6821_v28 = vrot.slane %v6809_v8, %v6136_v37 }
 0x60b   : > { %3292 = vmatmul.mubr.bf16.gmra.mrb[84].mxu1 %v6596_v38 }
 0x60c   : > { %3301 = vmatprep.mubr.bf16.mxu1 %v6650_v31  ;;  %4752 = vmatpush3.bf16.msra.mxu1 %v6607_v43 }
 0x60d   : > { %4745 = vmatprep.subr.bf16.mxu1 %v6616_v46 }
 0x610   : > { %4753 = vmatpush3.bf16.msra.mxu1 %v6632_v51 }
 0x611   : > { %4746 = vmatprep.subr.bf16.mxu1 %v6642_v53 }
 0x613   : > { %3302 = vmatmul.mubr.bf16.gmra.mrb[88].mxu1 %v6644_v58 }
 0x614   : > { %3311 = vmatprep.mubr.bf16.mxu1 %v6697_v17  ;;  %4754 = vmatpush3.bf16.msra.mxu1 %v6656_v39 }
 0x615   : > { %4747 = vmatprep.subr.bf16.mxu1 %v6665_v63 }
 0x618   : > { %4755 = vmatpush3.bf16.msra.mxu1 %v6681_v10 }
 0x619   : > { %4748 = vmatprep.subr.bf16.mxu1 %v6690_v30 }
 0x61b   : > { %3312 = vmatmul.mubr.bf16.gmra.mrb[92].mxu1 %v6692_v15 }
 0x61c   : > { %4756 = vmatpush3.bf16.msra.mxu1 %v6703_v18  ;;  %3435 = vmatprep.mubr.bf16.mxu1 %v6598_v41 }
 0x61d   : > { %4749 = vmatprep.subr.bf16.mxu1 %v6714_v21 }
 0x620   : > { %4757 = vmatpush3.bf16.msra.mxu1 %v5303_v23 }
 0x623   : > { %3436 = vmatmul.mubr.bf16.vlgmr.msra.gmra.mrb[96].mxu1 %v6596_v38  ;;  %v6824_v38 = vrot.slane %v6809_v8, %v2587_v11 }
 0x624   : > { %3443 = vmatprep.mubr.bf16.mxu1 %v6650_v31 }
 0x62b   : > { %3444 = vmatmul.mubr.bf16.gmra.mrb[100].mxu1 %v6644_v58 }
 0x62c   : > { %3451 = vmatprep.mubr.bf16.mxu1 %v6697_v17  ;;  %v2591_v17 = vsub.s32 6, %v6127_v34 }
 0x62e   : > { %v6845_v55 = vrot.slane %v6809_v8, %v2591_v17 }
 0x633   : > { %3452 = vmatmul.mubr.bf16.gmra.mrb[104].mxu1 %v6692_v15 }
 0x696   : > { %v3210_v41 = vpop.f32.mrb[64].mxu1  ;;  %v3356_v43 = vpop.f32.mrb[16].mxu0 }
 0x697   : > { %v3211_v46 = vadd.f32 %v3210_v41, %v6814_v13  ;;  %v3357_v51 = vadd.f32 %v3356_v43, %v6817_v20  ;;  %v3212_v53 = vpop.f32.mrb[65].mxu1  ;;  %v3358_v54 = vpop.f32.mrb[17].mxu0 }
 0x698   : > { %v3213_v35 = vadd.f32 %v3212_v53, %v6821_v28  ;;  %v3359_v56 = vadd.f32 %v3358_v54, %v6824_v38  ;;  %v3214_v57 = vpop.f32.mrb[66].mxu1  ;;  %v3360_v58 = vpop.f32.mrb[18].mxu0 }
 0x699   : > { %v3460_v60 = vmul.f32 0.5, %v3211_v46  ;;  %v3464_v37 = vmul.f32 0.5, %v3357_v51  ;;  %v3215_v31 = vadd.f32 %v3214_v57, %v6814_v13  ;;  %v3361_v32 = vadd.f32 %v3360_v58, %v6817_v20  ;;  %v3216_v39 = vpop.f32.mrb[67].mxu1  ;;  %v3362_v40 = vpop.f32.mrb[19].mxu0 }
 0x69a   : > { %v3461_v61 = vmul.f32 0.5, %v3213_v35  ;;  %v3465_v62 = vmul.f32 0.5, %v3359_v56  ;;  %v3217_v63 = vadd.f32 %v3216_v39, %v6821_v28  ;;  %v3363_v0 = vadd.f32 %v3362_v40, %v6824_v38 }
 0x69b   : > { %5344 = vtanh.f32 %v3460_v60  ;;  %v3467_v1 = vmul.f32 0.5, %v3215_v31  ;;  %v3471_v3 = vmul.f32 0.5, %v3361_v32 }
 0x69c   : > { %5346 = vtanh.f32 %v3464_v37  ;;  %v3468_v4 = vmul.f32 0.5, %v3217_v63  ;;  %v3472_v6 = vmul.f32 0.5, %v3363_v0 }
 0x69d   : > { %5348 = vtanh.f32 %v3461_v61 }
 0x69e   : > { %5350 = vtanh.f32 %v3465_v62  ;;  %v3220_v5 = vpop.f32.mrb[68].mxu1  ;;  %v3366_v10 = vpop.f32.mrb[20].mxu0 }
 0x69f   : > { %5352 = vtanh.f32 %v3467_v1  ;;  %v3221_v29 = vadd.f32 %v3220_v5, %v6814_v13  ;;  %v3367_v12 = vadd.f32 %v3366_v10, %v6817_v20  ;;  %v3222_v2 = vpop.f32.mrb[69].mxu1  ;;  %v3368_v30 = vpop.f32.mrb[21].mxu0 }
 0x6a0   : > { %5354 = vtanh.f32 %v3471_v3  ;;  %v3223_v7 = vadd.f32 %v3222_v2, %v6821_v28  ;;  %v3369_v14 = vadd.f32 %v3368_v30, %v6824_v38  ;;  %v3224_v15 = vpop.f32.mrb[70].mxu1  ;;  %v3370_v16 = vpop.f32.mrb[22].mxu0 }
 0x6a1   : > { %5356 = vtanh.f32 %v3468_v4  ;;  %v3474_v18 = vmul.f32 0.5, %v3221_v29  ;;  %v3478_v19 = vmul.f32 0.5, %v3367_v12  ;;  %v3225_v21 = vadd.f32 %v3224_v15, %v6814_v13  ;;  %v3226_v22 = vpop.f32.mrb[71].mxu1  ;;  %v3372_v23 = vpop.f32.mrb[23].mxu0 }
 0x6a2   : > { %5358 = vtanh.f32 %v3472_v6  ;;  %v3475_v33 = vmul.f32 0.5, %v3223_v7  ;;  %v3479_v36 = vmul.f32 0.5, %v3369_v14  ;;  %v3371_v42 = vadd.f32 %v3370_v16, %v6817_v20 }
 0x6a3   : > { %5360 = vtanh.f32 %v3474_v18  ;;  %v3481_v9 = vmul.f32 0.5, %v3225_v21  ;;  %v3227_v44 = vadd.f32 %v3226_v22, %v6821_v28  ;;  %v3373_v45 = vadd.f32 %v3372_v23, %v6824_v38 }
 0x6a4   : > { %5362 = vtanh.f32 %v3478_v19  ;;  %v3485_v24 = vmul.f32 0.5, %v3371_v42 }
 0x6a5   : > { %v5345_v47 = vpop.eup %5344  ;;  %5364 = vtanh.f32 %v3475_v33  ;;  %v3482_v48 = vmul.f32 0.5, %v3227_v44  ;;  %v3486_v50 = vmul.f32 0.5, %v3373_v45 }
 0x6a6   : > { %v5347_v49 = vpop.eup %5346  ;;  %v3572_v25 = vmul.f32 0.5, %v5345_v47  ;;  %5366 = vtanh.f32 %v3479_v36 }
 0x6a7   : > { %v5349_v26 = vpop.eup %5348  ;;  %v3576_v27 = vmul.f32 0.5, %v5347_v49  ;;  %5368 = vtanh.f32 %v3481_v9  ;;  %v3376_v52 = vpop.f32.mrb[24].mxu0 }
 0x6a8   : > { %v5351_v59 = vpop.eup %5350  ;;  %v3628_v11 = vadd.f32 0.5, %v3572_v25  ;;  %v3573_v41 = vmul.f32 0.5, %v5349_v26  ;;  %5370 = vtanh.f32 %v3485_v24  ;;  %v3230_v43 = vpop.f32.mrb[72].mxu1  ;;  %v3377_v46 = vadd.f32 %v3376_v52, %v6817_v20 }
 0x6a9   : > { %v3378_v51 = vpop.f32.mrb[25].mxu0  ;;  %v5353_v53 = vpop.eup %5352  ;;  %v3632_v54 = vadd.f32 0.5, %v3576_v27  ;;  %v3577_v35 = vmul.f32 0.5, %v5351_v59  ;;  %5372 = vtanh.f32 %v3482_v48  ;;  %v3231_v56 = vadd.f32 %v3230_v43, %v6814_v13 }
 0x6aa   : > { %v3232_v57 = vpop.f32.mrb[73].mxu1  ;;  %v3380_v58 = vpop.f32.mrb[26].mxu0  ;;  %v3629_v37 = vadd.f32 0.5, %v3573_v41  ;;  %v3579_v31 = vmul.f32 0.5, %v5353_v53  ;;  %5374 = vtanh.f32 %v3486_v50  ;;  %v3492_v32 = vmul.f32 0.5, %v3377_v46 }
 0x6ab   : > { %v5355_v60 = vpop.eup %5354  ;;  %v3234_v39 = vpop.f32.mrb[74].mxu1  ;;  %v3633_v62 = vadd.f32 0.5, %v3577_v35  ;;  %v3488_v0 = vmul.f32 0.5, %v3231_v56  ;;  %v3233_v1 = vadd.f32 %v3232_v57, %v6821_v28  ;;  %v3379_v17 = vadd.f32 %v3378_v51, %v6824_v38 }
 0x6ac   : > { %v6849_v40 = vpop.f32.mrb[27].mxu0  ;;  %v5357_v61 = vpop.eup %5356  ;;  %v3583_v63 = vmul.f32 0.5, %v5355_v60  ;;  %v4573_v6 = vpack.c.bf16 %v3629_v37, %v3628_v11  ;;  %v3635_v5 = vadd.f32 0.5, %v3579_v31  ;;  %5376 = vtanh.f32 %v3492_v32 }
 0x6ad   : > { %v3236_v3 = vpop.f32.mrb[75].mxu1  ;;  %v5359_v4 = vpop.eup %5358  ;;  %v3580_v10 = vmul.f32 0.5, %v5357_v61  ;;  %v4575_v12 = vpack.c.bf16 %v3633_v62, %v3632_v54  ;;  %5378 = vtanh.f32 %v3488_v0  ;;  %v3489_v16 = vmul.f32 0.5, %v3233_v1 }
 0x6ae   : > { %v5361_v29 = vpop.eup %5360  ;;  %v3639_v2 = vadd.f32 0.5, %v3583_v63  ;;  %v3584_v30 = vmul.f32 0.5, %v5359_v4  ;;  %3860 = vst [vmem:[%s6854_s27] sm:$0xff] %v4573_v6  ;;  %v3235_v22 = vadd.f32 %v3234_v39, %v6814_v13  ;;  %v3381_v23 = vadd.f32 %v3380_v58, %v6817_v20 }
 0x6af   : > { %v5363_v7 = vpop.eup %5362  ;;  %v3636_v14 = vadd.f32 0.5, %v3580_v10  ;;  %v3586_v15 = vmul.f32 0.5, %v5361_v29  ;;  %3862 = vst [vmem:[%s6854_s27 + $0x10] sm:$0xff] %v4575_v12  ;;  %v3386_v33 = vpop.f32.mrb[28].mxu0  ;;  %5380 = vtanh.f32 %v3489_v16  ;;  %v3493_v50 = vmul.f32 0.5, %v3379_v17 }
 0x6b0   : > { %v5365_v18 = vpop.eup %5364  ;;  %v3640_v19 = vadd.f32 0.5, %v3584_v30  ;;  %v3590_v21 = vmul.f32 0.5, %v5363_v7  ;;  %v3240_v45 = vpop.f32.mrb[76].mxu1  ;;  %v3495_v41 = vmul.f32 0.5, %v3235_v22  ;;  %v3499_v43 = vmul.f32 0.5, %v3381_v23 }
 0x6b1   : > { %v5367_v36 = vpop.eup %5366  ;;  %v4577_v42 = vpack.c.bf16 %v3636_v14, %v3635_v5  ;;  %v3642_v9 = vadd.f32 0.5, %v3586_v15  ;;  %v3587_v44 = vmul.f32 0.5, %v5365_v18  ;;  %v3388_v24 = vpop.f32.mrb[29].mxu0  ;;  %5382 = vtanh.f32 %v3493_v50 }
 0x6b2   : > { %v5369_v47 = vpop.eup %5368  ;;  %v4579_v48 = vpack.c.bf16 %v3640_v19, %v3639_v2  ;;  %v3646_v49 = vadd.f32 0.5, %v3590_v21  ;;  %v3591_v25 = vmul.f32 0.5, %v5367_v36  ;;  %v3242_v26 = vpop.f32.mrb[77].mxu1  ;;  %v3237_v56 = vadd.f32 %v3236_v3, %v6821_v28 }
 0x6b3   : > { %v3390_v27 = vpop.f32.mrb[30].mxu0  ;;  %v5371_v52 = vpop.eup %5370  ;;  %3865 = vst [vmem:[%s6854_s27 + $0x1c] sm:$0xff] %v4577_v42  ;;  %v3643_v59 = vadd.f32 0.5, %v3587_v44  ;;  %v3593_v11 = vmul.f32 0.5, %v5369_v47  ;;  %5384 = vtanh.f32 %v3495_v41  ;;  %v3383_v1 = vadd.f32 %v6849_v40, %v6824_v38 }
 0x6b4   : > { %v3244_v46 = vpop.f32.mrb[78].mxu1  ;;  %v3392_v51 = vpop.f32.mrb[31].mxu0  ;;  %3867 = vst [vmem:[%s6854_s27 + $0x2c] sm:$0xff] %v4579_v48  ;;  %v3647_v54 = vadd.f32 0.5, %v3591_v25  ;;  %v3597_v35 = vmul.f32 0.5, %v5371_v52  ;;  %5386 = vtanh.f32 %v3499_v43  ;;  %v3496_v0 = vmul.f32 0.5, %v3237_v56 }
 0x6b5   : > { %v5373_v53 = vpop.eup %5372  ;;  %v3246_v57 = vpop.f32.mrb[79].mxu1  ;;  %v4581_v60 = vpack.c.bf16 %v3643_v59, %v3642_v9  ;;  %v3649_v37 = vadd.f32 0.5, %v3593_v11  ;;  %v3241_v3 = vadd.f32 %v3240_v45, %v6814_v13  ;;  %v3387_v10 = vadd.f32 %v3386_v33, %v6817_v20 }
 0x6b6   : > { %v5375_v58 = vpop.eup %5374  ;;  %v3594_v31 = vmul.f32 0.5, %v5373_v53  ;;  %v4583_v32 = vpack.c.bf16 %v3647_v54, %v3646_v49  ;;  %v3653_v39 = vadd.f32 0.5, %v3597_v35  ;;  %v3243_v29 = vadd.f32 %v3242_v26, %v6821_v28 }
 0x6b7   : > { %v3598_v61 = vmul.f32 0.5, %v5375_v58  ;;  %v5377_v62 = vpop.eup %5376  ;;  %3869 = vst [vmem:[%s6854_s27 + $0x38] sm:$0xff] %v4581_v60  ;;  %v4682_v12 = vpop.f32.mrb[32].mxu0  ;;  %5388 = vtanh.f32 %v3496_v0  ;;  %v3500_v7 = vmul.f32 0.5, %v3383_v1  ;;  %v3502_v16 = vmul.f32 0.5, %v3241_v3 }
 0x6b8   : > { %v3650_v63 = vadd.f32 0.5, %v3594_v31  ;;  %v5379_v4 = vpop.eup %5378  ;;  %3871 = vst [vmem:[%s6854_s27 + $0x48] sm:$0xff] %v4583_v32  ;;  %v3604_v5 = vmul.f32 0.5, %v5377_v62  ;;  %v4683_v14 = vpop.f32.mrb[33].mxu0  ;;  %v3506_v17 = vmul.f32 0.5, %v3387_v10  ;;  %v3503_v22 = vmul.f32 0.5, %v3243_v29 }
 0x6b9   : > { %v3654_v6 = vadd.f32 0.5, %v3598_v61  ;;  %v3600_v30 = vmul.f32 0.5, %v5379_v4  ;;  %v4685_v18 = vpop.f32.mrb[34].mxu0  ;;  %v5381_v19 = vpop.eup %5380  ;;  %5390 = vtanh.f32 %v3500_v7  ;;  %v3389_v23 = vadd.f32 %v3388_v24, %v6824_v38 }
 0x6ba   : > { %v4585_v2 = vpack.c.bf16 %v3650_v63, %v3649_v37  ;;  %v3660_v40 = vadd.f32 0.5, %v3604_v5  ;;  %v4686_v33 = vpop.f32.mrb[35].mxu0  ;;  %v3601_v36 = vmul.f32 0.5, %v5381_v19  ;;  %5392 = vtanh.f32 %v3502_v16 }
 0x6bb   : > { %v4587_v15 = vpack.c.bf16 %v3654_v6, %v3653_v39  ;;  %v3656_v21 = vadd.f32 0.5, %v3600_v30  ;;  %v3245_v42 = vadd.f32 %v3244_v46, %v6814_v13  ;;  %v3391_v9 = vadd.f32 %v3390_v27, %v6817_v20  ;;  %v5383_v48 = vpop.eup %5382 }
 0x6bc   : > { %3873 = vst [vmem:[%s6854_s27 + $0x54] sm:$0xff] %v4585_v2  ;;  %5394 = vtanh.f32 %v3506_v17  ;;  %v3507_v44 = vmul.f32 0.5, %v3389_v23  ;;  %v3247_v45 = vadd.f32 %v3246_v57, %v6821_v28  ;;  %v3393_v47 = vadd.f32 %v3392_v51, %v6824_v38 }
 0x6bd   : > { %3875 = vst [vmem:[%s6854_s27 + $0x64] sm:$0xff] %v4587_v15  ;;  %v3657_v49 = vadd.f32 0.5, %v3601_v36  ;;  %5396 = vtanh.f32 %v3503_v22  ;;  %v3509_v25 = vmul.f32 0.5, %v3245_v42  ;;  %v3513_v24 = vmul.f32 0.5, %v3391_v9  ;;  %v5385_v50 = vpop.eup %5384 }
 0x6be   : > { %v3605_v26 = vmul.f32 0.5, %v5383_v48  ;;  %5398 = vtanh.f32 %v3507_v44  ;;  %v3510_v52 = vmul.f32 0.5, %v3247_v45  ;;  %v3514_v59 = vmul.f32 0.5, %v3393_v47  ;;  %v5387_v13 = vpop.eup %5386 }
 0x6bf   : > { %v4589_v11 = vpack.c.bf16 %v3657_v49, %v3656_v21  ;;  %v3607_v20 = vmul.f32 0.5, %v5385_v50  ;;  %5400 = vtanh.f32 %v3509_v25  ;;  %v4684_v27 = vadd.f32 %v4683_v14, %v4682_v12 }
 0x6c0   : > { %v3661_v28 = vadd.f32 0.5, %v3605_v26  ;;  %5402 = vtanh.f32 %v3513_v24  ;;  %v4687_v38 = vadd.f32 %v4686_v33, %v4685_v18  ;;  %v3611_v41 = vmul.f32 0.5, %v5387_v13 }
 0x6c1   : > { %3877 = vst [vmem:[%s6854_s27 + $0x70] sm:$0xff] %v4589_v11  ;;  %5404 = vtanh.f32 %v3510_v52  ;;  %v3430_v43 = vadd.f32 %v4684_v27, %v6845_v55  ;;  %v5389_v46 = vpop.eup %5388  ;;  %v3663_v54 = vadd.f32 0.5, %v3607_v20  ;;  %v2575_v9 = vsub.s32 2, %v6127_v34 }
 0x6c2   : > { %v4591_v51 = vpack.c.bf16 %v3661_v28, %v3660_v40  ;;  %5406 = vtanh.f32 %v3514_v59  ;;  %v3433_v53 = vadd.f32 %v4687_v38, %v6845_v55  ;;  %v3608_v35 = vmul.f32 0.5, %v5389_v46 }
 0x6c3   : > { %v3466_v56 = vmul.f32 0.5, %v3430_v43  ;;  %v5391_v57 = vpop.eup %5390  ;;  %v3667_v37 = vadd.f32 0.5, %v3611_v41  ;;  %v2579_v48 = vsub.s32 3, %v6127_v34  ;;  %v6891_v26 = vrot.slane %v6809_v8, %v2575_v9 }
 0x6c4   : > { %3879 = vst [vmem:[%s6854_s27 + $0x80] sm:$0xff] %v4591_v51  ;;  %v3473_v58 = vmul.f32 0.5, %v3433_v53  ;;  %v5393_v60 = vpop.eup %5392  ;;  %v3664_v31 = vadd.f32 0.5, %v3608_v35  ;;  %v3612_v32 = vmul.f32 0.5, %v5391_v57 }
 0x6c5   : > { %5408 = vtanh.f32 %v3466_v56  ;;  %v3614_v61 = vmul.f32 0.5, %v5393_v60  ;;  %v6894_v59 = vrot.slane %v6809_v8, %v2579_v48 }
 0x6c6   : > { %v5395_v39 = vpop.eup %5394  ;;  %5410 = vtanh.f32 %v3473_v58  ;;  %v4593_v63 = vpack.c.bf16 %v3664_v31, %v3663_v54  ;;  %v3668_v0 = vadd.f32 0.5, %v3612_v32 }
 0x6c7   : > { %v5397_v62 = vpop.eup %5396  ;;  %v3618_v1 = vmul.f32 0.5, %v5395_v39  ;;  %v3670_v4 = vadd.f32 0.5, %v3614_v61 }
 0x6c8   : > { %v5399_v3 = vpop.eup %5398  ;;  %v3615_v6 = vmul.f32 0.5, %v5397_v62  ;;  %3881 = vst [vmem:[%s6854_s27 + $0x8c] sm:$0xff] %v4593_v63  ;;  %v4595_v10 = vpack.c.bf16 %v3668_v0, %v3667_v37 }
 0x6c9   : > { %v5401_v5 = vpop.eup %5400  ;;  %v3674_v29 = vadd.f32 0.5, %v3618_v1  ;;  %v3619_v12 = vmul.f32 0.5, %v5399_v3 }
 0x6ca   : > { %v5403_v2 = vpop.eup %5402  ;;  %v3671_v30 = vadd.f32 0.5, %v3615_v6  ;;  %v3621_v7 = vmul.f32 0.5, %v5401_v5  ;;  %3883 = vst [vmem:[%s6854_s27 + $0x9c] sm:$0xff] %v4595_v10 }
 0x6cb   : > { %v5405_v14 = vpop.eup %5404  ;;  %v3675_v15 = vadd.f32 0.5, %v3619_v12  ;;  %v3625_v40 = vmul.f32 0.5, %v5403_v2 }
 0x6cc   : > { %v5407_v16 = vpop.eup %5406  ;;  %v4597_v17 = vpack.c.bf16 %v3671_v30, %v3670_v4  ;;  %v3677_v18 = vadd.f32 0.5, %v3621_v7  ;;  %v3622_v19 = vmul.f32 0.5, %v5405_v14 }
 0x6cd   : > { %v4599_v21 = vpack.c.bf16 %v3675_v15, %v3674_v29  ;;  %v3681_v22 = vadd.f32 0.5, %v3625_v40  ;;  %v3626_v23 = vmul.f32 0.5, %v5407_v16 }
 0x6ce   : > { %3885 = vst [vmem:[%s6854_s27 + $0xa8] sm:$0xff] %v4597_v17  ;;  %v3678_v33 = vadd.f32 0.5, %v3622_v19 }
 0x6cf   : > { %v5409_v36 = vpop.eup %5408  ;;  %3887 = vst [vmem:[%s6854_s27 + $0xb8] sm:$0xff] %v4599_v21  ;;  %v3682_v42 = vadd.f32 0.5, %v3626_v23 }
 0x6d0   : > { %v5411_v44 = vpop.eup %5410  ;;  %v4601_v45 = vpack.c.bf16 %v3678_v33, %v3677_v18  ;;  %v3578_v47 = vmul.f32 0.5, %v5409_v36 }
 0x6d1   : > { %v4603_v49 = vpack.c.bf16 %v3682_v42, %v3681_v22  ;;  %v3585_v25 = vmul.f32 0.5, %v5411_v44 }
 0x6d2   : > { %3889 = vst [vmem:[%s6854_s27 + $0xc4] sm:$0xff] %v4601_v45  ;;  %v3634_v24 = vadd.f32 0.5, %v3578_v47 }
 0x6d3   : > { %3891 = vst [vmem:[%s6854_s27 + $0xd4] sm:$0xff] %v4603_v49  ;;  %v3641_v50 = vadd.f32 0.5, %v3585_v25 }
 0x6d4   : > { %v4576_v52 = vpack.c.bf16 %v3634_v24, %v3634_v24 }
 0x6d5   : > { %v4580_v13 = vpack.c.bf16 %v3641_v50, %v3641_v50 }
 0x6d6   : > { %3864 = vst.msk [vmem:[%s6854_s27 + $0x18] sm:$0xf] %vm3863_vm2, %v4576_v52  ;;  %v3283_v11 = vpop.f32.mrb[80].mxu1 }
 0x6d7   : > { %3868 = vst.msk [vmem:[%s6854_s27 + $0x34] sm:$0xf] %vm3863_vm2, %v4580_v13  ;;  %v3284_v34 = vadd.f32 %v3283_v11, %v6891_v26  ;;  %v3285_v20 = vpop.f32.mrb[81].mxu1 }
 0x6d8   : > { %v3286_v27 = vadd.f32 %v3285_v20, %v6894_v59  ;;  %v3287_v28 = vpop.f32.mrb[82].mxu1 }
 0x6d9   : > { %v3462_v38 = vmul.f32 0.5, %v3284_v34  ;;  %v3288_v41 = vadd.f32 %v3287_v28, %v6891_v26  ;;  %v3289_v43 = vpop.f32.mrb[83].mxu1 }
 0x6da   : > { %v3463_v46 = vmul.f32 0.5, %v3286_v27  ;;  %v3290_v8 = vadd.f32 %v3289_v43, %v6894_v59 }
 0x6db   : > { %5412 = vtanh.f32 %v3462_v38  ;;  %v3469_v51 = vmul.f32 0.5, %v3288_v41 }
 0x6dc   : > { %5414 = vtanh.f32 %v3463_v46  ;;  %v3470_v53 = vmul.f32 0.5, %v3290_v8 }
 0x6dd   : > { %5416 = vtanh.f32 %v3469_v51 }
 0x6de   : > { %5418 = vtanh.f32 %v3470_v53  ;;  %v3293_v54 = vpop.f32.mrb[84].mxu1 }
 0x6df   : > { %v3294_v35 = vadd.f32 %v3293_v54, %v6891_v26  ;;  %v3295_v56 = vpop.f32.mrb[85].mxu1 }
 0x6e0   : > { %v3296_v57 = vadd.f32 %v3295_v56, %v6894_v59  ;;  %v3297_v58 = vpop.f32.mrb[86].mxu1 }
 0x6e1   : > { %v3476_v60 = vmul.f32 0.5, %v3294_v35  ;;  %v3298_v37 = vadd.f32 %v3297_v58, %v6891_v26  ;;  %v3299_v31 = vpop.f32.mrb[87].mxu1 }
 0x6e2   : > { %v3477_v32 = vmul.f32 0.5, %v3296_v57  ;;  %v3300_v39 = vadd.f32 %v3299_v31, %v6894_v59 }
 0x6e3   : > { %5420 = vtanh.f32 %v3476_v60  ;;  %v3483_v61 = vmul.f32 0.5, %v3298_v37 }
 0x6e4   : > { %5422 = vtanh.f32 %v3477_v32  ;;  %v3484_v62 = vmul.f32 0.5, %v3300_v39 }
 0x6e5   : > { %v5413_v63 = vpop.eup %5412  ;;  %5424 = vtanh.f32 %v3483_v61 }
 0x6e6   : > { %v5415_v0 = vpop.eup %5414  ;;  %v3574_v1 = vmul.f32 0.5, %v5413_v63  ;;  %5426 = vtanh.f32 %v3484_v62  ;;  %v3303_v3 = vpop.f32.mrb[88].mxu1 }
 0x6e7   : > { %v5417_v4 = vpop.eup %5416  ;;  %v3575_v6 = vmul.f32 0.5, %v5415_v0  ;;  %v3304_v5 = vadd.f32 %v3303_v3, %v6891_v26  ;;  %v3305_v10 = vpop.f32.mrb[89].mxu1 }
 0x6e8   : > { %v5419_v29 = vpop.eup %5418  ;;  %v3630_v12 = vadd.f32 0.5, %v3574_v1  ;;  %v3581_v2 = vmul.f32 0.5, %v5417_v4  ;;  %v3306_v30 = vadd.f32 %v3305_v10, %v6894_v59  ;;  %v3307_v7 = vpop.f32.mrb[90].mxu1 }
 0x6e9   : > { %v3631_v14 = vadd.f32 0.5, %v3575_v6  ;;  %v3582_v15 = vmul.f32 0.5, %v5419_v29  ;;  %v3490_v40 = vmul.f32 0.5, %v3304_v5  ;;  %v3308_v16 = vadd.f32 %v3307_v7, %v6891_v26  ;;  %v3309_v17 = vpop.f32.mrb[91].mxu1 }
 0x6ea   : > { %v3637_v18 = vadd.f32 0.5, %v3581_v2  ;;  %v3491_v19 = vmul.f32 0.5, %v3306_v30  ;;  %v3310_v21 = vadd.f32 %v3309_v17, %v6894_v59 }
 0x6eb   : > { %v4574_v22 = vpack.c.bf16 %v3631_v14, %v3630_v12  ;;  %v3638_v23 = vadd.f32 0.5, %v3582_v15  ;;  %5428 = vtanh.f32 %v3490_v40  ;;  %v3497_v33 = vmul.f32 0.5, %v3308_v16 }
 0x6ec   : > { %5430 = vtanh.f32 %v3491_v19  ;;  %v3498_v36 = vmul.f32 0.5, %v3310_v21 }
 0x6ed   : > { %v5421_v42 = vpop.eup %5420  ;;  %3861 = vst [vmem:[%s6854_s27 + $0x8] sm:$0xff] %v4574_v22  ;;  %v4578_v9 = vpack.c.bf16 %v3638_v23, %v3637_v18  ;;  %5432 = vtanh.f32 %v3497_v33 }
 0x6ee   : > { %v5423_v44 = vpop.eup %5422  ;;  %v3588_v45 = vmul.f32 0.5, %v5421_v42  ;;  %5434 = vtanh.f32 %v3498_v36  ;;  %v3313_v47 = vpop.f32.mrb[92].mxu1 }
 0x6ef   : > { %v5425_v48 = vpop.eup %5424  ;;  %3866 = vst [vmem:[%s6854_s27 + $0x24] sm:$0xff] %v4578_v9  ;;  %v3589_v49 = vmul.f32 0.5, %v5423_v44  ;;  %v3314_v25 = vadd.f32 %v3313_v47, %v6891_v26  ;;  %v3315_v24 = vpop.f32.mrb[93].mxu1 }
 0x6f0   : > { %v5427_v50 = vpop.eup %5426  ;;  %v3644_v52 = vadd.f32 0.5, %v3588_v45  ;;  %v3595_v13 = vmul.f32 0.5, %v5425_v48  ;;  %v3316_v11 = vadd.f32 %v3315_v24, %v6894_v59  ;;  %v3317_v34 = vpop.f32.mrb[94].mxu1 }
 0x6f1   : > { %v3645_v20 = vadd.f32 0.5, %v3589_v49  ;;  %v3596_v27 = vmul.f32 0.5, %v5427_v50  ;;  %v3504_v28 = vmul.f32 0.5, %v3314_v25  ;;  %v3318_v38 = vadd.f32 %v3317_v34, %v6891_v26  ;;  %v3319_v41 = vpop.f32.mrb[95].mxu1 }
 0x6f2   : > { %v3651_v43 = vadd.f32 0.5, %v3595_v13  ;;  %v3505_v46 = vmul.f32 0.5, %v3316_v11  ;;  %v3320_v8 = vadd.f32 %v3319_v41, %v6894_v59 }
 0x6f3   : > { %v4582_v51 = vpack.c.bf16 %v3645_v20, %v3644_v52  ;;  %v3652_v53 = vadd.f32 0.5, %v3596_v27  ;;  %5436 = vtanh.f32 %v3504_v28  ;;  %v3511_v54 = vmul.f32 0.5, %v3318_v38 }
 0x6f4   : > { %5438 = vtanh.f32 %v3505_v46  ;;  %v3512_v35 = vmul.f32 0.5, %v3320_v8 }
 0x6f5   : > { %v5429_v56 = vpop.eup %5428  ;;  %3870 = vst [vmem:[%s6854_s27 + $0x40] sm:$0xff] %v4582_v51  ;;  %v4586_v57 = vpack.c.bf16 %v3652_v53, %v3651_v43  ;;  %5440 = vtanh.f32 %v3511_v54 }
 0x6f6   : > { %v5431_v58 = vpop.eup %5430  ;;  %v3602_v60 = vmul.f32 0.5, %v5429_v56  ;;  %5442 = vtanh.f32 %v3512_v35  ;;  %v4688_v26 = vpop.f32.mrb[96].mxu1 }
 0x6f7   : > { %v5433_v37 = vpop.eup %5432  ;;  %3874 = vst [vmem:[%s6854_s27 + $0x5c] sm:$0xff] %v4586_v57  ;;  %v3603_v31 = vmul.f32 0.5, %v5431_v58  ;;  %v4689_v32 = vpop.f32.mrb[97].mxu1 }
 0x6f8   : > { %v5435_v59 = vpop.eup %5434  ;;  %v3658_v39 = vadd.f32 0.5, %v3602_v60  ;;  %v3609_v61 = vmul.f32 0.5, %v5433_v37  ;;  %v4690_v62 = vadd.f32 %v4689_v32, %v4688_v26  ;;  %v4691_v63 = vpop.f32.mrb[98].mxu1 }
 0x6f9   : > { %v3659_v0 = vadd.f32 0.5, %v3603_v31  ;;  %v3610_v1 = vmul.f32 0.5, %v5435_v59  ;;  %v4692_v3 = vpop.f32.mrb[99].mxu1 }
 0x6fa   : > { %v3665_v4 = vadd.f32 0.5, %v3609_v61  ;;  %v3438_v6 = vadd.f32 %v4690_v62, %v6845_v55  ;;  %v4693_v5 = vadd.f32 %v4692_v3, %v4691_v63 }
 0x6fb   : > { %v4590_v10 = vpack.c.bf16 %v3659_v0, %v3658_v39  ;;  %v3666_v29 = vadd.f32 0.5, %v3610_v1 }
 0x6fc   : > { %v3480_v12 = vmul.f32 0.5, %v3438_v6  ;;  %v3441_v2 = vadd.f32 %v4693_v5, %v6845_v55 }
 0x6fd   : > { %v5437_v30 = vpop.eup %5436  ;;  %3878 = vst [vmem:[%s6854_s27 + $0x78] sm:$0xff] %v4590_v10  ;;  %v4594_v7 = vpack.c.bf16 %v3666_v29, %v3665_v4 }
 0x6fe   : > { %v5439_v14 = vpop.eup %5438  ;;  %v3616_v15 = vmul.f32 0.5, %v5437_v30  ;;  %5444 = vtanh.f32 %v3480_v12  ;;  %v3487_v40 = vmul.f32 0.5, %v3441_v2  ;;  %v4694_v16 = vpop.f32.mrb[100].mxu1 }
 0x6ff   : > { %v5441_v17 = vpop.eup %5440  ;;  %3882 = vst [vmem:[%s6854_s27 + $0x94] sm:$0xff] %v4594_v7  ;;  %v3617_v18 = vmul.f32 0.5, %v5439_v14  ;;  %v4695_v19 = vpop.f32.mrb[101].mxu1 }
 0x700   : > { %v5443_v21 = vpop.eup %5442  ;;  %v3672_v22 = vadd.f32 0.5, %v3616_v15  ;;  %v3623_v23 = vmul.f32 0.5, %v5441_v17  ;;  %5446 = vtanh.f32 %v3487_v40  ;;  %v4696_v33 = vadd.f32 %v4695_v19, %v4694_v16  ;;  %v4697_v36 = vpop.f32.mrb[102].mxu1 }
 0x701   : > { %v3673_v42 = vadd.f32 0.5, %v3617_v18  ;;  %v3624_v9 = vmul.f32 0.5, %v5443_v21  ;;  %v4698_v44 = vpop.f32.mrb[103].mxu1 }
 0x702   : > { %v3679_v45 = vadd.f32 0.5, %v3623_v23  ;;  %v3446_v47 = vadd.f32 %v4696_v33, %v6845_v55  ;;  %v4699_v48 = vadd.f32 %v4698_v44, %v4697_v36 }
 0x703   : > { %v4598_v49 = vpack.c.bf16 %v3673_v42, %v3672_v22  ;;  %v3680_v25 = vadd.f32 0.5, %v3624_v9 }
 0x704   : > { %v3494_v24 = vmul.f32 0.5, %v3446_v47  ;;  %v3449_v50 = vadd.f32 %v4699_v48, %v6845_v55 }
 0x705   : > { %3886 = vst [vmem:[%s6854_s27 + $0xb0] sm:$0xff] %v4598_v49  ;;  %v4602_v52 = vpack.c.bf16 %v3680_v25, %v3679_v45 }
 0x706   : > { %5448 = vtanh.f32 %v3494_v24  ;;  %v3501_v13 = vmul.f32 0.5, %v3449_v50  ;;  %v4700_v11 = vpop.f32.mrb[104].mxu1 }
 0x707   : > { %3890 = vst [vmem:[%s6854_s27 + $0xcc] sm:$0xff] %v4602_v52  ;;  %v4701_v34 = vpop.f32.mrb[105].mxu1 }
 0x708   : > { %v5445_v20 = vpop.eup %5444  ;;  %5450 = vtanh.f32 %v3501_v13  ;;  %v4702_v27 = vadd.f32 %v4701_v34, %v4700_v11  ;;  %v4703_v28 = vpop.f32.mrb[106].mxu1 }
 0x709   : > { %v3592_v38 = vmul.f32 0.5, %v5445_v20  ;;  %v4704_v41 = vpop.f32.mrb[107].mxu1 }
 0x70a   : > { %v5447_v43 = vpop.eup %5446  ;;  %v3454_v46 = vadd.f32 %v4702_v27, %v6845_v55  ;;  %v4705_v8 = vadd.f32 %v4704_v41, %v4703_v28 }
 0x70b   : > { %v3648_v51 = vadd.f32 0.5, %v3592_v38  ;;  %v3599_v53 = vmul.f32 0.5, %v5447_v43 }
 0x70c   : > { %v3508_v54 = vmul.f32 0.5, %v3454_v46  ;;  %v3457_v35 = vadd.f32 %v4705_v8, %v6845_v55 }
 0x70d   : > { %v4584_v56 = vpack.c.bf16 %v3648_v51, %v3648_v51  ;;  %v3655_v57 = vadd.f32 0.5, %v3599_v53 }
 0x70e   : > { %5452 = vtanh.f32 %v3508_v54  ;;  %v3515_v58 = vmul.f32 0.5, %v3457_v35 }
 0x70f   : > { %3872 = vst.msk [vmem:[%s6854_s27 + $0x50] sm:$0xf] %vm3863_vm2, %v4584_v56  ;;  %v4588_v60 = vpack.c.bf16 %v3655_v57, %v3655_v57 }
 0x710   : > { %v5449_v26 = vpop.eup %5448  ;;  %5454 = vtanh.f32 %v3515_v58 }
 0x711   : > { %3876 = vst.msk [vmem:[%s6854_s27 + $0x6c] sm:$0xf] %vm3863_vm2, %v4588_v60  ;;  %v3606_v37 = vmul.f32 0.5, %v5449_v26 }
 0x712   : > { %v5451_v31 = vpop.eup %5450 }
 0x713   : > { %v3662_v32 = vadd.f32 0.5, %v3606_v37  ;;  %v3613_v59 = vmul.f32 0.5, %v5451_v31 }
 0x715   : > { %v4592_v55 = vpack.c.bf16 %v3662_v32, %v3662_v32  ;;  %v3669_v39 = vadd.f32 0.5, %v3613_v59 }
 0x717   : > { %3880 = vst.msk [vmem:[%s6854_s27 + $0x88] sm:$0xf] %vm3863_vm2, %v4592_v55  ;;  %v4596_v61 = vpack.c.bf16 %v3669_v39, %v3669_v39 }
 0x718   : > { %v5453_v62 = vpop.eup %5452 }
 0x719   : > { %3884 = vst.msk [vmem:[%s6854_s27 + $0xa4] sm:$0xf] %vm3863_vm2, %v4596_v61  ;;  %v3620_v63 = vmul.f32 0.5, %v5453_v62 }
 0x71a   : > { %v5455_v0 = vpop.eup %5454 }
 0x71b   : > { %v3676_v1 = vadd.f32 0.5, %v3620_v63  ;;  %v3627_v3 = vmul.f32 0.5, %v5455_v0  ;;  %3912 = sbr.rel (!%p5707_p5) target bundleno = 1856 (0x740), region = 80 }
 0x71d   : > { %v4600_v4 = vpack.c.bf16 %v3676_v1, %v3676_v1  ;;  %v3683_v6 = vadd.f32 0.5, %v3627_v3 }
 0x71f   : > { %3888 = vst.msk [vmem:[%s6854_s27 + $0xc0] sm:$0xf] %vm3863_vm2, %v4600_v4  ;;  %v4604_v5 = vpack.c.bf16 %v3683_v6, %v3683_v6 }
 0x721   : > { %3892 = vst.msk [vmem:[%s6854_s27 + $0xdc] sm:$0xf] %vm3863_vm2, %v4604_v5 }
 0x722   : > { %s7107_s26 = smov (!%p3915_p11, %s3914_s26), 8 }
 0x723   : > { %s6946_s18 = smul.u32 448, %s7107_s26 }
 0x725   : > { %s3920_s17 = ssub.s32 3584, %s6946_s18 }
 0x726   : > { %3921 = vsyncadd %s7077_s29, %s3920_s17  ;;  %p4553_p12 = scmp.ne.s32.totalorder %s6946_s18, 0  ;;  %s4824_s15 = smul.u32 3584, %s5690_s22 }
 0x727   : > { %s3927_s25 = sshll.u32 %s6854_s27, 4  ;;  %s5586_s17 = smov [#allocation2]   ;;  %s6959_s25 = int_to_ptr.vmem [resolvable:$true] %s3927_s25 }
 0x728   : > { %s6957_s23 = scalar_lea.hbm %s7069_s14, %s4824_s15  ;;  %s5456_s26 = scalar_lea.vmem %s6959_s25, %s6946_s18 }
 0x729   : > { %p5457_p13 = scmp.ne.s32.totalorder %s6959_s25, %s5456_s26  ;;  %s5460_s29 = sshll.u32 %s5586_s17, 4  ;;  %s5461_s29 = int_to_ptr.vmem [resolvable:$false] %s5460_s29 }
 0x72a   : > { %s5462_s0 = scalar_lea.vmem %s5461_s29, 7168  ;;  %p5463_p2 = scmp.lt.s32.totalorder %s6959_s25, %s5461_s29 }
 0x72b   : > { %p5458_p0 = pnand %p5457_p13, %p4553_p12  ;;  %p5464_p3 = scmp.lt.s32.totalorder %s5462_s0, %s5456_s26 }
 0x72d   : > { %p5459_p1 = pneg %p5458_p0  ;;  %p5465_p4 = por %p5464_p3, %p5463_p2 }
 0x72f   : > { %p5466_p7 = pnand %p5465_p4, %p5459_p1 }
 0x731   : > { %5469 = shalt.err (!%p5466_p7)
}
 0x732   : > { %s5470_s27 = scalar_lea.hbm %s6957_s23, %s6946_s18  ;;  %s5474_s24 = scalar_lea.hbm %s7069_s14, 11200 }
 0x733   : > { %p5471_p8 = scmp.ne.s32.totalorder %s6957_s23, %s5470_s27  ;;  %p5475_p11 = scmp.lt.u32.totalorder %s6957_s23, %s7069_s14 }
 0x734   : > { %p5476_p13 = scmp.lt.u32.totalorder %s5474_s24, %s5470_s27  ;;  %p5478_p1 = scmp.lt.u32.totalorder %s5470_s27, %s6957_s23 }
 0x735   : > { %p5472_p9 = pnand %p5471_p8, %p4553_p12 }
 0x736   : > { %p5477_p0 = por %p5476_p13, %p5475_p11 }
 0x737   : > { %p5473_p10 = pneg %p5472_p9 }
 0x738   : > { %p5479_p2 = por %p5478_p1, %p5477_p0 }
 0x73a   : > { %p5480_p3 = pnand %p5479_p2, %p5473_p10 }
 0x73c   : > { %5483 = shalt.err (!%p5480_p3)
}
 0x73d   : > { %s5587_s26 = smov 448   ;;  %s5588_s17 = smov 28  }
 0x73e   : > { %s7093_s15 = scalar_lea.sflag [#allocation3], %s6193_s16 }
 0x73f   : > { %3933 = dma.vmem_to_hbm [thread:$0]  (%p4553_p12), %s6959_s25, %s6946_s18, %s6957_s23, %s7093_s15, %s5587_s26, %s5587_s26, %s5588_s17  }
 0x740 PF: > { %3936 = sbr.rel (!%p5707_p5) target bundleno = 1912 (0x778), region = 84  ;;  %s3938_s27 = ssub.s32 (%p5707_p5), 25, %s5733_s30 }
 0x741   : > { %s4605_s20 = sshll.u32 (%p5707_p5), %s5690_s22, 6  ;;  %p3939_p4 = scmp.lt.s32.totalorder (%p5707_p5), %s3938_s27, 8 }
 0x742   : > { %s7094_s0 = sld [smem:[#allocation15_spill]] (%p5707_p5) }
 0x747   : > { %s7109_s27 = smov (!%p3939_p4, %s3938_s27), 8 }
 0x748   : > { %s6994_s1 = scalar_lea.vmem %s7094_s0, %s4605_s20   ;;  %s4558_s2 = sshll.u32 %s7109_s27, 7 }
 0x749   : > { %p4561_p7 = scmp.eq.s32.totalorder %s4558_s2, 0 }
 0x74a   : > { %s7000_s16 = sshrl.u32 (!%p4561_p7), %s7109_s27, 3 }
 0x74b   : > { %3947 = sbr.rel (%p4561_p7) target bundleno = 1912 (0x778), region = 88  ;;  %p4562_p5 = scmp.le.s32.totalorder (!%p4561_p7), %s7000_s16, 0 }
 0x752   : > { %4158 = sbr.rel (%p4562_p5) target bundleno = 1891 (0x763), region = 180  ;;  %s7095_s22 = smov (!%p4562_p5), %s6994_s1 }
 0x753   : > { %s7096_s28 = smov (!%p4562_p5), %s6207_s21  ;;  %s7009_s30 = smov (!%p4562_p5), 0  }
 0x754   : > { %s7011_s18 = smov (!%p4562_p5), 0  }
 0x759 LB: >> { %v4023_v10 = vld [vmem:[%s5558_s28] sm:$0xff]  ;;  %v4025_v29 = vld [vmem:[%s5558_s28 + $0x8] sm:$0xff]  ;;  %v4027_v12 = vld [vmem:[%s5558_s28 + $0x10] sm:$0xff]  ;;  %s4039_s2 = sadd.s32 1, %s5562_s30  ;;  %s4017_s18 = sadd.s32 1, %s5566_s18   ;;  %s5566_s18 = sphi %s7011_s18, %s4017_s18   ;;  %s5562_s30 = sphi %s7009_s30, %s7097_s30   ;;  %s5558_s28 = sphi %s7096_s28, %s4044_s28   ;;  %s5554_s22 = sphi %s7095_s22, %s4045_s22  }
 0x75a   : >> { %4024 = vst [vmem:[%s5554_s22] sm:$0xff] %v4023_v10  ;;  %4026 = vst [vmem:[%s5554_s22 + $0x8] sm:$0xff] %v4025_v29  ;;  %v4029_v2 = vld [vmem:[%s5558_s28 + $0x18] sm:$0xff]  ;;  %v4031_v30 = vld [vmem:[%s5558_s28 + $0x20] sm:$0xff]  ;;  %p4040_p12 = scmp.ge.s32.totalorder %s4039_s2, %s7000_s16  ;;  %p4016_p8 = scmp.ge.s32.totalorder %s4017_s18, %s7000_s16 }
 0x75b   : >> { %4028 = vst [vmem:[%s5554_s22 + $0x10] sm:$0xff] %v4027_v12  ;;  %v4033_v7 = vld [vmem:[%s5558_s28 + $0x28] sm:$0xff]  ;;  %4030 = vst [vmem:[%s5554_s22 + $0x18] sm:$0xff] %v4029_v2  ;;  %v4035_v14 = vld [vmem:[%s5558_s28 + $0x30] sm:$0xff] }
 0x75c   : >> { %4032 = vst [vmem:[%s5554_s22 + $0x20] sm:$0xff] %v4031_v30  ;;  %4034 = vst [vmem:[%s5554_s22 + $0x28] sm:$0xff] %v4033_v7  ;;  %v4037_v15 = vld [vmem:[%s5558_s28 + $0x38] sm:$0xff]  ;;  %s7111_s2 = smov (%p4040_p12, %s4039_s2), 0  ;;  %4019 = sbr.rel (!%p4016_p8) target bundleno = 1881 (0x759), region = 186 }
 0x75d   : >> { %4036 = vst [vmem:[%s5554_s22 + $0x30] sm:$0xff] %v4035_v14  ;;  %4038 = vst [vmem:[%s5554_s22 + $0x38] sm:$0xff] %v4037_v15  ;;  %s4563_s25 = sshll.u32 %s7111_s2, 6  ;;  %s7097_s30 = smov %s7111_s2 }
 0x75e   : >> { %s4044_s28 = scalar_lea.vmem %s6207_s21, %s4563_s25 [#allocation4]   ;;  %s4045_s22 = scalar_lea.vmem %s6994_s1, %s4563_s25  }
 0x763 PF: > { %s7030_s23 = sand.u32 7, %s7109_s27   ;;  %s4606_s26 = sshll.u32 %s7000_s16, 6 }
 0x764   : > { %s4050_s17 = scalar_lea.vmem %s6207_s21, %s4606_s26 [#allocation4]   ;;  %s4052_s15 = scalar_lea.vmem %s6994_s1, %s4606_s26  }
 0x765   : > { %p4568_p9 = scmp.le.s32.totalorder %s7030_s23, 0 }
 0x766   : > { %s5568_s20 = smov (!%p4568_p9), %s4052_s15   ;;  %s5572_s24 = smov (!%p4568_p9), %s4050_s17  }
 0x767   : > { %4172 = sbr.rel (%p4568_p9) target bundleno = 1912 (0x778), region = 191  ;;  %s5576_s29 = smov (!%p4568_p9), 0  }
 0x768   : > { %s5580_s0 = smov (!%p4568_p9), 0  }
 0x76e LB: >> { %v4062_v40 = vld [vmem:[%s5574_s24] sm:$0xff]  ;;  %s4064_s27 = sadd.s32 1, %s5578_s29  ;;  %s4056_s0 = sadd.s32 1, %s5582_s0   ;;  %s5582_s0 = sphi %s5580_s0, %s4056_s0   ;;  %s5578_s29 = sphi %s5576_s29, %s5577_s29   ;;  %s5574_s24 = sphi %s5572_s24, %s4069_s24   ;;  %s5570_s20 = sphi %s5568_s20, %s4070_s20  }
 0x76f   : >> { %4063 = vst [vmem:[%s5570_s20] sm:$0xff] %v4062_v40  ;;  %p4065_p10 = scmp.ge.s32.totalorder %s4064_s27, %s7030_s23  ;;  %p4055_p11 = scmp.ge.s32.totalorder %s4056_s0, %s7030_s23 }
 0x771   : >> { %s7113_s27 = smov (%p4065_p10, %s4064_s27), 0  ;;  %4058 = sbr.rel (!%p4055_p11) target bundleno = 1902 (0x76e), region = 197 }
 0x772   : >> { %s4569_s1 = sshll.u32 %s7113_s27, 3  ;;  %s5577_s29 = smov %s7113_s27  }
 0x773   : >> { %s4069_s24 = scalar_lea.vmem %s4050_s17, %s4569_s1 [#allocation4]   ;;  %s4070_s20 = scalar_lea.vmem %s4052_s15, %s4569_s1  }
 0x778 PF: > { %s7098_s21 = sld [smem:[#allocation8_spill]]  ;;  %s7099_s16 = sld [smem:[#allocation6_spill]] }
 0x77e   : > { %p4830_p13 = scmp.ge.s32.totalorder %s7098_s21, 2  ;;  %s4082_s28 = sand.u32 1, %s7099_s16  }
 0x77f   : > { %s4083_s30 = scalar_lea.sflag [#allocation3], %s4082_s28 }
 0x780   : > { %p4827_p0 = pnand %p4830_p13, %p5711_p6 }
 0x782   : > { %5533 = dma.done.wait (!%p4827_p0), %s4083_s30, 3584  }
 0x783   : > { %5535 = vsyncadd (!%p4827_p0), %s4083_s30, 4294963712  ;;  %s7101_s21 = sld [smem:[#allocation9_spill]]  ;;  %s7102_s2 = sld [smem:[#allocation7_spill]] }
 0x784   : > { %s7103_s20 = sld [smem:[#allocation10_spill]]  ;;  %s7104_s18 = smov %s5542_s19 }
 0x789   : > { %p26_p1 = scmp.ge.s32.totalorder %s7101_s21, 6   ;;  %s7105_s19 = smov %s7102_s2 }
 0x78b   :  { %28 = sbr.rel (!%p26_p1) target bundleno = 8 (0x8), region = 208 }
 0x792   :  { %4095 = vsyncpa [#allocation3], 1 }
 0x793   :  { %4097 = vsyncpa [#allocation3 + $0x1], 1 }

</bundles_post_ra>
